<compile_context>
chip_gen: v7x
topology: tpu7x:2x2x1
jax: 0.10.0
libtpu: 0.0.40
codegen_flags: <defaults>
</compile_context>

<pallas_src>
import functools
import math

import jax
import jax.numpy as jnp
from jax.experimental import pallas as pl
from jax.experimental.pallas import tpu as pltpu

# ----------------------------------------------------------------------------- labels
labels = ['B-sign', 'I-sign', 'B-recipient_key', 'I-recipient_key', 'B-recipient_name', 'I-recipient_name', 'B-recipient_phone_number_key', 'I-recipient_phone_number_key', 'B-recipient_phone_number', 'I-recipient_phone_number', 'B-recipient_address_do', 'I-recipient_address_do', 'B-recipient_address_si', 'I-recipient_address_si', 'B-recipient_address_gun', 'I-recipient_address_gun', 'B-recipient_address_gu', 'I-recipient_address_gu', 'B-recipient_address_eup', 'I-recipient_address_eup', 'B-recipient_address_myeon', 'I-recipient_address_myeon', 'B-recipient_address_ri', 'I-recipient_address_ri', 'B-recipient_address_dong', 'I-recipient_address_dong', 'B-recipient_address_jibeon', 'I-recipient_address_jibeon', 'B-recipient_address_ro_name', 'I-recipient_address_ro_name', 'B-recipient_address_gil_name', 'I-recipient_address_gil_name', 'B-recipient_address_ro_number', 'I-recipient_address_ro_number', 'B-recipient_address_building_number', 'I-recipient_address_building_number', 'B-recipient_address_room_number', 'I-recipient_address_room_number', 'B-recipient_address_detail', 'I-recipient_address_detail', 'B-sender_key', 'I-sender_key', 'B-sender_name', 'I-sender_name', 'B-sender_phone_number_key', 'I-sender_phone_number_key', 'B-sender_phone_number', 'I-sender_phone_number', 'B-sender_address_do', 'I-sender_address_do', 'B-sender_address_si', 'I-sender_address_si', 'B-sender_address_gun', 'I-sender_address_gun', 'B-sender_address_gu', 'I-sender_address_gu', 'B-sender_address_eup', 'I-sender_address_eup', 'B-sender_address_myeon', 'I-sender_address_myeon', 'B-sender_address_ri', 'I-sender_address_ri', 'B-sender_address_dong', 'I-sender_address_dong', 'B-sender_address_jibeon', 'I-sender_address_jibeon', 'B-sender_address_ro_name', 'I-sender_address_ro_name', 'B-sender_address_gil_name', 'I-sender_address_gil_name', 'B-sender_address_ro_number', 'I-sender_address_ro_number', 'B-sender_address_building_number', 'I-sender_address_building_number', 'B-sender_address_room_number', 'I-sender_address_room_number', 'B-sender_address_detail', 'I-sender_address_detail', 'B-volume_key', 'I-volume_key', 'B-volume', 'I-volume', 'B-delivery_message_key', 'I-delivery_message_key', 'B-delivery_message', 'I-delivery_message', 'B-product_name_key', 'I-product_name_key', 'B-product_name', 'I-product_name', 'B-tracking_number_key', 'I-tracking_number_key', 'B-tracking_number', 'I-tracking_number', 'B-weight_key', 'I-weight_key', 'B-weight', 'I-weight', 'B-terminal_number', 'I-terminal_number', 'B-company_name', 'I-company_name', 'B-handwriting', 'I-handwriting', 'B-others', 'I-others']
NUM_LABELS = len(labels)           # 108
NUM_LABELS_PAD = 128               # lane-dense classifier output (sliced back to 108)

# ----------------------------------------------------------------------------- config (small)
B = 2            # batch
S = 8            # sequence length
H = 32           # hidden size
N_HEADS = 2
D_HEAD = H // N_HEADS
INTER = 64       # FFN intermediate
N_LAYERS = 2
VOCAB = 50
MAX_POS = 16
MAX_2D = 64      # bbox coordinate range for 2D position embeddings
IMG = 32         # resized image side
C_IN = 3
C_MID = 8
C_FEAT = 16      # backbone output channels (stand-in for resnet101 layer3's 1024)
ROI_OUT = 3
SAMPLING = 2
SPATIAL_SCALE = (IMG // 4) / IMG   # two stride-2 convs -> feature map IMG/4
LN_EPS = 1e-12
M = B * S
POOL_DIM = C_FEAT * ROI_OUT * ROI_OUT


# ============================================================================= fused encoder kernel
def _encoder_kernel(x_ref, mask_ref, eg_ref, eb_ref,
                    wqkv_ref, bqkv_ref, wo_ref, bo_ref, ln1g_ref, ln1b_ref,
                    wi_ref, bi_ref, wo2_ref, bo2_ref, ln2g_ref, ln2b_ref,
                    out_ref, hid_ref):
    """One grid step == one transformer layer.  Hidden state stays resident in VMEM."""
    l = pl.program_id(0)

    def ln(x, g, b):
        mu = jnp.mean(x, axis=-1, keepdims=True)
        var = jnp.mean((x - mu) ** 2, axis=-1, keepdims=True)
        return (x - mu) * jax.lax.rsqrt(var + LN_EPS) * g + b

    # layer 0: embedding LayerNorm fused here (dropout is identity in eval mode)
    @pl.when(l == 0)
    def _():
        hid_ref[...] = ln(x_ref[...], eg_ref[...], eb_ref[...])

    x = hid_ref[...]                                        # (M, H)

    # ---- fused QKV projection (one matmul, 96 output lanes)
    qkv = jnp.dot(x, wqkv_ref[0], preferred_element_type=jnp.float32) + bqkv_ref[0]
    q = qkv[:, 0:H]
    k = qkv[:, H:2 * H]
    v = qkv[:, 2 * H:3 * H]

    mask = mask_ref[...]                                    # (B, S) additive mask
    scale = 1.0 / math.sqrt(D_HEAD)

    # ---- multi-head attention, unrolled over (batch, head); no in-kernel transposes
    ctx_rows = []
    for b in range(B):
        qb = q[b * S:(b + 1) * S, :]
        kb = k[b * S:(b + 1) * S, :]
        vb = v[b * S:(b + 1) * S, :]
        mb = mask[b:b + 1, :]                               # (1, S)
        head_out = []
        for h in range(N_HEADS):
            qh = qb[:, h * D_HEAD:(h + 1) * D_HEAD]
            kh = kb[:, h * D_HEAD:(h + 1) * D_HEAD]
            vh = vb[:, h * D_HEAD:(h + 1) * D_HEAD]
            s = jax.lax.dot_general(qh, kh, (((1,), (1,)), ((), ())),
                                    preferred_element_type=jnp.float32)
            s = s * scale + mb
            s = s - jnp.max(s, axis=-1, keepdims=True)
            p = jnp.exp(s)
            p = p / jnp.sum(p, axis=-1, keepdims=True)
            head_out.append(jnp.dot(p, vh, preferred_element_type=jnp.float32))
        ctx_rows.append(jnp.concatenate(head_out, axis=1))  # (S, H)
    ctx = jnp.concatenate(ctx_rows, axis=0)                 # (M, H)

    # ---- attention output projection + residual + LayerNorm (fused epilogue)
    attn_out = jnp.dot(ctx, wo_ref[0], preferred_element_type=jnp.float32) + bo_ref[0]
    x1 = ln(attn_out + x, ln1g_ref[0], ln1b_ref[0])

    # ---- FFN + residual + LayerNorm (fused epilogue)
    inter = jnp.dot(x1, wi_ref[0], preferred_element_type=jnp.float32) + bi_ref[0]
    # TODO(synk): HF LayoutLM uses exact (erf) GELU; tanh approximation kept for EUP-friendly lowering.
    inter = jax.nn.gelu(inter, approximate=True)
    ffn = jnp.dot(inter, wo2_ref[0], preferred_element_type=jnp.float32) + bo2_ref[0]
    x2 = ln(ffn + x1, ln2g_ref[0], ln2b_ref[0])

    hid_ref[...] = x2

    @pl.when(l == pl.num_programs(0) - 1)
    def _():
        out_ref[...] = x2


def fused_encoder(x_emb, mask_add, p):
    """x_emb: (M, H) un-normalized embeddings; mask_add: (B, S) additive mask."""
    st = p["stack"]
    per_layer = lambda l: (l, 0, 0)
    shared2d = lambda l: (0, 0)
    return pl.pallas_call(
        _encoder_kernel,
        out_shape=jax.ShapeDtypeStruct((M, H), jnp.float32),
        grid=(N_LAYERS,),
        in_specs=[
            pl.BlockSpec((M, H), shared2d),                 # x_emb
            pl.BlockSpec((B, S), shared2d),                 # additive mask
            pl.BlockSpec((1, H), shared2d),                 # emb LN gamma
            pl.BlockSpec((1, H), shared2d),                 # emb LN beta
            pl.BlockSpec((1, H, 3 * H), per_layer),         # wqkv
            pl.BlockSpec((1, 1, 3 * H), per_layer),         # bqkv
            pl.BlockSpec((1, H, H), per_layer),             # wo
            pl.BlockSpec((1, 1, H), per_layer),             # bo
            pl.BlockSpec((1, 1, H), per_layer),             # ln1 gamma
            pl.BlockSpec((1, 1, H), per_layer),             # ln1 beta
            pl.BlockSpec((1, H, INTER), per_layer),         # wi
            pl.BlockSpec((1, 1, INTER), per_layer),         # bi
            pl.BlockSpec((1, INTER, H), per_layer),         # wo2
            pl.BlockSpec((1, 1, H), per_layer),             # bo2
            pl.BlockSpec((1, 1, H), per_layer),             # ln2 gamma
            pl.BlockSpec((1, 1, H), per_layer),             # ln2 beta
        ],
        out_specs=pl.BlockSpec((M, H), shared2d),
        scratch_shapes=[pltpu.VMEM((M, H), jnp.float32)],
        compiler_params=pltpu.CompilerParams(
            dimension_semantics=("arbitrary",)),
    )(x_emb.astype(jnp.float32), mask_add.astype(jnp.float32),
      p["emb_ln_g"], p["emb_ln_b"],
      st["wqkv"], st["bqkv"], st["wo"], st["bo"], st["ln1_g"], st["ln1_b"],
      st["wi"], st["bi"], st["wo2"], st["bo2"], st["ln2_g"], st["ln2_b"])


# ============================================================================= conv matmul kernel (transposed, lane-dense)
def _convT_kernel(wt_ref, at_ref, b_ref, o_ref):
    acc = jnp.dot(wt_ref[...], at_ref[...], preferred_element_type=jnp.float32)
    o_ref[...] = jnp.maximum(acc + b_ref[...], 0.0).astype(o_ref.dtype)


def conv2d_relu(x_nchw, w, bias, stride, pad):
    """Conv (NCHW in/out) via im2col + transposed Pallas matmul (output last dim = B*oH*oW)."""
    x = jnp.transpose(x_nchw, (0, 2, 3, 1))                      # NHWC
    x = jnp.pad(x, ((0, 0), (pad, pad), (pad, pad), (0, 0)))
    Bn, Hp, Wp, Cin = x.shape
    kh, kw, _, Cout = w.shape
    outH = (Hp - kh) // stride + 1
    outW = (Wp - kw) // stride + 1
    cols = []
    for i in range(kh):
        for j in range(kw):
            patch = x[:, i:i + outH * stride:stride, j:j + outW * stride:stride, :]  # (B,oH,oW,Cin)
            cols.append(jnp.transpose(patch, (3, 0, 1, 2)).reshape(Cin, Bn * outH * outW))
    at = jnp.concatenate(cols, axis=0)                           # (kh*kw*Cin, B*oH*oW), rows (i,j,cin)
    wt = w.reshape(kh * kw * Cin, Cout).T                        # (Cout, kh*kw*Cin)
    K = kh * kw * Cin
    Ncols = Bn * outH * outW
    yT = pl.pallas_call(
        _convT_kernel,
        out_shape=jax.ShapeDtypeStruct((Cout, Ncols), jnp.float32),
        grid=(1,),
        in_specs=[
            pl.BlockSpec((Cout, K), lambda i: (0, 0)),
            pl.BlockSpec((K, Ncols), lambda i: (0, 0)),
            pl.BlockSpec((Cout, 1), lambda i: (0, 0)),
        ],
        out_specs=pl.BlockSpec((Cout, Ncols), lambda i: (0, 0)),
    )(wt.astype(jnp.float32), at.astype(jnp.float32),
      bias.reshape(Cout, 1).astype(jnp.float32))
    return jnp.transpose(yT.reshape(Cout, Bn, outH, outW), (1, 0, 2, 3))   # NCHW


# ============================================================================= visual head kernel (proj + add + classifier)
def _head_kernel(seq_ref, pooled_ref, pw_ref, pb_ref, cw_ref, cb_ref, o_ref):
    proj = jnp.dot(pooled_ref[...], pw_ref[...], preferred_element_type=jnp.float32) + pb_ref[...]
    hidden = seq_ref[...] + proj              # dropout: identity (eval mode)
    o_ref[...] = (jnp.dot(hidden, cw_ref[...], preferred_element_type=jnp.float32)
                  + cb_ref[...]).astype(o_ref.dtype)


def visual_head(seq2d, pooled2d, p):
    full = lambda i: (0, 0)
    return pl.pallas_call(
        _head_kernel,
        out_shape=jax.ShapeDtypeStruct((M, NUM_LABELS_PAD), jnp.float32),
        grid=(1,),
        in_specs=[
            pl.BlockSpec((M, H), full),
            pl.BlockSpec((M, POOL_DIM), full),
            pl.BlockSpec((POOL_DIM, H), full),
            pl.BlockSpec((1, H), full),
            pl.BlockSpec((H, NUM_LABELS_PAD), full),
            pl.BlockSpec((1, NUM_LABELS_PAD), full),
        ],
        out_specs=pl.BlockSpec((M, NUM_LABELS_PAD), full),
    )(seq2d.astype(jnp.float32), pooled2d.astype(jnp.float32),
      p["proj_w"], p["proj_b"], p["cls_w_pad"], p["cls_b_pad"])


# ============================================================================= plain-JAX glue
def roi_align(feat_nchw, boxes, spatial_scale, out_size=ROI_OUT, sr=SAMPLING):
    """torchvision-style RoIAlign (aligned=False). feat: (B,C,Hf,Wf), boxes: (B,S,4) xyxy."""
    # TODO(synk): data-dependent bilinear gather has no clean Pallas equivalent; done in plain JAX.
    Bn, C, Hf, Wf = feat_nchw.shape
    feat = jnp.transpose(feat_nchw, (0, 2, 3, 1))                # (B, Hf, Wf, C)
    Sn = boxes.shape[1]
    bx = boxes.astype(jnp.float32) * spatial_scale
    x0, y0, x1, y1 = bx[..., 0], bx[..., 1], bx[..., 2], bx[..., 3]
    roi_w = jnp.maximum(x1 - x0, 1.0)
    roi_h = jnp.maximum(y1 - y0, 1.0)
    bin_w = roi_w / out_size
    bin_h = roi_h / out_size

    ph = jnp.arange(out_size, dtype=jnp.float32)
    sub = (jnp.arange(sr, dtype=jnp.float32) + 0.5) / sr
    ys = y0[..., None, None] + bin_h[..., None, None] * (ph[:, None] + sub[None, :])  # (B,S,out,sr)
    xs = x0[..., None, None] + bin_w[..., None, None] * (ph[:, None] + sub[None, :])  # (B,S,out,sr)

    yy = jnp.broadcast_to(ys[:, :, :, :, None, None], (Bn, Sn, out_size, sr, out_size, sr))
    xx = jnp.broadcast_to(xs[:, :, None, None, :, :], (Bn, Sn, out_size, sr, out_size, sr))

    valid = (yy >= -1.0) & (yy <= Hf) & (xx >= -1.0) & (xx <= Wf)
    yc = jnp.clip(yy, 0.0, Hf - 1)
    xc = jnp.clip(xx, 0.0, Wf - 1)
    y_lo = jnp.floor(yc).astype(jnp.int32)
    x_lo = jnp.floor(xc).astype(jnp.int32)
    y_hi = jnp.minimum(y_lo + 1, Hf - 1)
    x_hi = jnp.minimum(x_lo + 1, Wf - 1)
    ly = yc - y_lo.astype(jnp.float32)
    lx = xc - x_lo.astype(jnp.float32)
    hy = 1.0 - ly
    hx = 1.0 - lx

    b_idx = jnp.arange(Bn)[:, None, None, None, None, None]

    def gather(yi, xi):
        return feat[b_idx, yi, xi]                               # (B,S,out,sr,out,sr,C)

    val = (hy * hx)[..., None] * gather(y_lo, x_lo) \
        + (hy * lx)[..., None] * gather(y_lo, x_hi) \
        + (ly * hx)[..., None] * gather(y_hi, x_lo) \
        + (ly * lx)[..., None] * gather(y_hi, x_hi)
    val = jnp.where(valid[..., None], val, 0.0)
    pooled = val.mean(axis=(3, 5))                               # (B, S, out, out, C)
    pooled = jnp.transpose(pooled, (0, 1, 4, 2, 3))              # (B, S, C, out, out) -> PyTorch C-major flatten
    return pooled.reshape(Bn, Sn, C * out_size * out_size)


def layoutlm_embeddings_raw(p, input_ids, bbox, token_type_ids):
    """Embedding gathers only; the embedding LayerNorm is fused into the encoder kernel."""
    position_ids = jnp.broadcast_to(jnp.arange(S, dtype=jnp.int32), (B, S))
    x0, y0, x1, y1 = bbox[..., 0], bbox[..., 1], bbox[..., 2], bbox[..., 3]
    e = p["word_emb"][input_ids]
    e = e + p["pos_emb"][position_ids]
    e = e + p["x_emb"][x0] + p["x_emb"][x1]
    e = e + p["y_emb"][y0] + p["y_emb"][y1]
    e = e + p["h_emb"][jnp.clip(y1 - y0, 0, MAX_2D - 1)]
    e = e + p["w_emb"][jnp.clip(x1 - x0, 0, MAX_2D - 1)]
    e = e + p["tok_emb"][token_type_ids]
    return e.reshape(M, H)


# ============================================================================= model
def forward(params, input_ids, bbox, attention_mask, token_type_ids,
            resized_images, resized_boxes):
    # --- LayoutLM text encoder -> sequence_output (single fused pallas_call)
    mask_add = (1.0 - attention_mask.astype(jnp.float32)) * -10000.0        # (B, S)
    x_emb = layoutlm_embeddings_raw(params, input_ids, bbox, token_type_ids)
    seq = fused_encoder(x_emb, mask_add, params)                            # (M, H)

    # --- visual backbone (resnet stand-in) + RoIAlign
    feat = conv2d_relu(resized_images, params["conv1_w"], params["conv1_b"], stride=2, pad=1)
    feat = conv2d_relu(feat, params["conv2_w"], params["conv2_b"], stride=2, pad=1)   # (B, C_FEAT, 8, 8)
    pooled = roi_align(feat, resized_boxes, SPATIAL_SCALE)                  # (B, S, POOL_DIM)

    # --- projection + residual visual add + classifier (single fused pallas_call, padded to 128 lanes)
    logits_pad = visual_head(seq, pooled.reshape(M, POOL_DIM), params)      # (M, 128)
    logits = logits_pad[:, :NUM_LABELS].reshape(B, S, NUM_LABELS)
    # TODO(synk): labels=None path only; masked CrossEntropyLoss branch not implemented.
    return logits


# ============================================================================= params
def init_params(key):
    keys = iter(jax.random.split(key, 64))

    def normal(shape, scale=0.02):
        return jax.random.normal(next(keys), shape, dtype=jnp.float32) * scale

    p = {
        "word_emb": normal((VOCAB, H)),
        "pos_emb": normal((MAX_POS, H)),
        "x_emb": normal((MAX_2D, H)),
        "y_emb": normal((MAX_2D, H)),
        "h_emb": normal((MAX_2D, H)),
        "w_emb": normal((MAX_2D, H)),
        "tok_emb": normal((2, H)),
        "emb_ln_g": jnp.ones((1, H), jnp.float32),
        "emb_ln_b": jnp.zeros((1, H), jnp.float32),
        "conv1_w": normal((3, 3, C_IN, C_MID), 0.1),
        "conv1_b": jnp.zeros((C_MID,), jnp.float32),
        "conv2_w": normal((3, 3, C_MID, C_FEAT), 0.1),
        "conv2_b": jnp.zeros((C_FEAT,), jnp.float32),
        "proj_w": normal((POOL_DIM, H)),
        "proj_b": jnp.zeros((1, H), jnp.float32),
    }
    cls_w = normal((H, NUM_LABELS))
    cls_b = jnp.zeros((NUM_LABELS,), jnp.float32)
    p["cls_w_pad"] = jnp.pad(cls_w, ((0, 0), (0, NUM_LABELS_PAD - NUM_LABELS)))
    p["cls_b_pad"] = jnp.pad(cls_b, (0, NUM_LABELS_PAD - NUM_LABELS)).reshape(1, NUM_LABELS_PAD)

    # stacked per-layer encoder weights (fused QKV)
    wqkv, bqkv, wo, bo, ln1g, ln1b = [], [], [], [], [], []
    wi, bi, wo2, bo2, ln2g, ln2b = [], [], [], [], [], []
    for _ in range(N_LAYERS):
        wq, wk, wv = normal((H, H)), normal((H, H)), normal((H, H))
        wqkv.append(jnp.concatenate([wq, wk, wv], axis=1))           # (H, 3H)
        bqkv.append(jnp.zeros((1, 3 * H), jnp.float32))
        wo.append(normal((H, H)))
        bo.append(jnp.zeros((1, H), jnp.float32))
        ln1g.append(jnp.ones((1, H), jnp.float32))
        ln1b.append(jnp.zeros((1, H), jnp.float32))
        wi.append(normal((H, INTER)))
        bi.append(jnp.zeros((1, INTER), jnp.float32))
        wo2.append(normal((INTER, H)))
        bo2.append(jnp.zeros((1, H), jnp.float32))
        ln2g.append(jnp.ones((1, H), jnp.float32))
        ln2b.append(jnp.zeros((1, H), jnp.float32))
    p["stack"] = {
        "wqkv": jnp.stack(wqkv), "bqkv": jnp.stack(bqkv),
        "wo": jnp.stack(wo), "bo": jnp.stack(bo),
        "ln1_g": jnp.stack(ln1g), "ln1_b": jnp.stack(ln1b),
        "wi": jnp.stack(wi), "bi": jnp.stack(bi),
        "wo2": jnp.stack(wo2), "bo2": jnp.stack(bo2),
        "ln2_g": jnp.stack(ln2g), "ln2_b": jnp.stack(ln2b),
    }
    return p


# ============================================================================= main
if __name__ == "__main__":
    root = jax.random.PRNGKey(0)
    k_par, k_ids, k_bb, k_im, k_rb = jax.random.split(root, 5)
    params = init_params(k_par)

    input_ids = jax.random.randint(k_ids, (B, S), 0, VOCAB, dtype=jnp.int32)

    kx0, ky0, kdx, kdy = jax.random.split(k_bb, 4)
    x0 = jax.random.randint(kx0, (B, S), 0, MAX_2D // 2, dtype=jnp.int32)
    y0 = jax.random.randint(ky0, (B, S), 0, MAX_2D // 2, dtype=jnp.int32)
    x1 = jnp.clip(x0 + jax.random.randint(kdx, (B, S), 1, MAX_2D // 2, dtype=jnp.int32), 0, MAX_2D - 1)
    y1 = jnp.clip(y0 + jax.random.randint(kdy, (B, S), 1, MAX_2D // 2, dtype=jnp.int32), 0, MAX_2D - 1)
    bbox = jnp.stack([x0, y0, x1, y1], axis=-1)

    attention_mask = jnp.ones((B, S), jnp.int32).at[:, -2:].set(0)
    token_type_ids = jnp.zeros((B, S), jnp.int32)

    resized_images = jax.random.normal(k_im, (B, C_IN, IMG, IMG), dtype=jnp.float32)

    rx0, ry0, rdx, rdy = jax.random.split(k_rb, 4)
    bx0 = jax.random.uniform(rx0, (B, S), minval=0.0, maxval=IMG / 2)
    by0 = jax.random.uniform(ry0, (B, S), minval=0.0, maxval=IMG / 2)
    bx1 = jnp.minimum(bx0 + jax.random.uniform(rdx, (B, S), minval=2.0, maxval=IMG / 2), float(IMG))
    by1 = jnp.minimum(by0 + jax.random.uniform(rdy, (B, S), minval=2.0, maxval=IMG / 2), float(IMG))
    resized_boxes = jnp.stack([bx0, by0, bx1, by1], axis=-1)   # (B, S, 4) image-coord xyxy

    fwd = jax.jit(forward)
    logits = fwd(params, input_ids, bbox, attention_mask, token_type_ids,
                 resized_images, resized_boxes)
    jax.block_until_ready(logits)
    assert logits.shape == (B, S, NUM_LABELS)
    print("KERNEL_OK")
</pallas_src>

<mosaic_0001>
module attributes {stable_mosaic.version = 11 : i64} {
  func.func @_convT_kernel(%arg0: i32, %arg1: memref<8x27xf32, #tpu.memory_space<vmem>>, %arg2: memref<27x512xf32, #tpu.memory_space<vmem>>, %arg3: memref<8x1xf32, #tpu.memory_space<vmem>>, %arg4: memref<8x512xf32, #tpu.memory_space<vmem>>) attributes {dimension_semantics = [#tpu.dimension_semantics<arbitrary>], iteration_bounds = array<i64: 1>, scalar_prefetch = 0 : i64, scratch_operands = 0 : i64, tpu.core_type = #tpu.core_type<tc>, window_params = [{pipeline_mode = #tpu.pipeline_mode<synchronous>, transform_indices = @transform_0, window_bounds = array<i64: 8, 27>}, {pipeline_mode = #tpu.pipeline_mode<synchronous>, transform_indices = @transform_1, window_bounds = array<i64: 27, 512>}, {pipeline_mode = #tpu.pipeline_mode<synchronous>, transform_indices = @transform_2, window_bounds = array<i64: 8, 1>}, {pipeline_mode = #tpu.pipeline_mode<synchronous>, transform_indices = @transform_3, window_bounds = array<i64: 8, 512>}]} {
    %c0 = arith.constant 0 : index
    %c0_0 = arith.constant 0 : index
    %0 = vector.load %arg1[%c0, %c0_0] : memref<8x27xf32, #tpu.memory_space<vmem>>, vector<8x27xf32>
    %c0_1 = arith.constant 0 : index
    %c0_2 = arith.constant 0 : index
    %1 = vector.load %arg2[%c0_1, %c0_2] : memref<27x512xf32, #tpu.memory_space<vmem>>, vector<27x512xf32>
    %cst = arith.constant dense<0.000000e+00> : vector<8x512xf32>
    %2 = tpu.matmul %0, %1, %cst {dimension_numbers = #tpu.dot_dimension_numbers<[1], [0], [0], [1], [0, 0, 1, 1], [], []>} : vector<8x27xf32>, vector<27x512xf32>, vector<8x512xf32> -> vector<8x512xf32>
    %c0_3 = arith.constant 0 : index
    %c0_4 = arith.constant 0 : index
    %3 = vector.load %arg3[%c0_3, %c0_4] : memref<8x1xf32, #tpu.memory_space<vmem>>, vector<8x1xf32>
    %4 = vector.broadcast %3 : vector<8x1xf32> to vector<8x512xf32>
    %5 = arith.addf %2, %4 : vector<8x512xf32>
    %cst_5 = arith.constant 0.000000e+00 : f32
    %6 = vector.broadcast %cst_5 : f32 to vector<8x512xf32>
    %7 = arith.maximumf %5, %6 : vector<8x512xf32>
    %c0_6 = arith.constant 0 : index
    %c0_7 = arith.constant 0 : index
    %8 = vector.load %arg4[%c0_6, %c0_7] : memref<8x512xf32, #tpu.memory_space<vmem>>, vector<8x512xf32>
    tpu.vector_store %arg4[%c0_6, %c0_7], %7 {strides = array<i32>} : memref<8x512xf32, #tpu.memory_space<vmem>>, vector<8x512xf32>,
    return
  }
  func.func @transform_0(%arg0: i32) -> (i32, i32) {
    %c0_i32 = arith.constant 0 : i32
    %c0_i32_0 = arith.constant 0 : i32
    %c0_i32_1 = arith.constant 0 : i32
    return %c0_i32, %c0_i32_0 : i32, i32
  }
  func.func @transform_1(%arg0: i32) -> (i32, i32) {
    %c0_i32 = arith.constant 0 : i32
    %c0_i32_0 = arith.constant 0 : i32
    %c0_i32_1 = arith.constant 0 : i32
    return %c0_i32, %c0_i32_0 : i32, i32
  }
  func.func @transform_2(%arg0: i32) -> (i32, i32) {
    %c0_i32 = arith.constant 0 : i32
    %c0_i32_0 = arith.constant 0 : i32
    %c0_i32_1 = arith.constant 0 : i32
    return %c0_i32, %c0_i32_0 : i32, i32
  }
  func.func @transform_3(%arg0: i32) -> (i32, i32) {
    %c0_i32 = arith.constant 0 : i32
    %c0_i32_0 = arith.constant 0 : i32
    %c0_i32_1 = arith.constant 0 : i32
    return %c0_i32, %c0_i32_0 : i32, i32
  }
}

module attributes {stable_mosaic.version = 11 : i64} {
  func.func @_convT_kernel(%arg0: i32, %arg1: memref<16x72xf32, #tpu.memory_space<vmem>>, %arg2: memref<72x128xf32, #tpu.memory_space<vmem>>, %arg3: memref<16x1xf32, #tpu.memory_space<vmem>>, %arg4: memref<16x128xf32, #tpu.memory_space<vmem>>) attributes {dimension_semantics = [#tpu.dimension_semantics<arbitrary>], iteration_bounds = array<i64: 1>, scalar_prefetch = 0 : i64, scratch_operands = 0 : i64, tpu.core_type = #tpu.core_type<tc>, window_params = [{pipeline_mode = #tpu.pipeline_mode<synchronous>, transform_indices = @transform_0, window_bounds = array<i64: 16, 72>}, {pipeline_mode = #tpu.pipeline_mode<synchronous>, transform_indices = @transform_1, window_bounds = array<i64: 72, 128>}, {pipeline_mode = #tpu.pipeline_mode<synchronous>, transform_indices = @transform_2, window_bounds = array<i64: 16, 1>}, {pipeline_mode = #tpu.pipeline_mode<synchronous>, transform_indices = @transform_3, window_bounds = array<i64: 16, 128>}]} {
    %c0 = arith.constant 0 : index
    %c0_0 = arith.constant 0 : index
    %0 = vector.load %arg1[%c0, %c0_0] : memref<16x72xf32, #tpu.memory_space<vmem>>, vector<16x72xf32>
    %c0_1 = arith.constant 0 : index
    %c0_2 = arith.constant 0 : index
    %1 = vector.load %arg2[%c0_1, %c0_2] : memref<72x128xf32, #tpu.memory_space<vmem>>, vector<72x128xf32>
    %cst = arith.constant dense<0.000000e+00> : vector<16x128xf32>
    %2 = tpu.matmul %0, %1, %cst {dimension_numbers = #tpu.dot_dimension_numbers<[1], [0], [0], [1], [0, 0, 1, 1], [], []>} : vector<16x72xf32>, vector<72x128xf32>, vector<16x128xf32> -> vector<16x128xf32>
    %c0_3 = arith.constant 0 : index
    %c0_4 = arith.constant 0 : index
    %3 = vector.load %arg3[%c0_3, %c0_4] : memref<16x1xf32, #tpu.memory_space<vmem>>, vector<16x1xf32>
    %4 = vector.broadcast %3 : vector<16x1xf32> to vector<16x128xf32>
    %5 = arith.addf %2, %4 : vector<16x128xf32>
    %cst_5 = arith.constant 0.000000e+00 : f32
    %6 = vector.broadcast %cst_5 : f32 to vector<16x128xf32>
    %7 = arith.maximumf %5, %6 : vector<16x128xf32>
    %c0_6 = arith.constant 0 : index
    %c0_7 = arith.constant 0 : index
    %8 = vector.load %arg4[%c0_6, %c0_7] : memref<16x128xf32, #tpu.memory_space<vmem>>, vector<16x128xf32>
    tpu.vector_store %arg4[%c0_6, %c0_7], %7 {strides = array<i32>} : memref<16x128xf32, #tpu.memory_space<vmem>>, vector<16x128xf32>,
    return
  }
  func.func @transform_0(%arg0: i32) -> (i32, i32) {
    %c0_i32 = arith.constant 0 : i32
    %c0_i32_0 = arith.constant 0 : i32
    %c0_i32_1 = arith.constant 0 : i32
    return %c0_i32, %c0_i32_0 : i32, i32
  }
  func.func @transform_1(%arg0: i32) -> (i32, i32) {
    %c0_i32 = arith.constant 0 : i32
    %c0_i32_0 = arith.constant 0 : i32
    %c0_i32_1 = arith.constant 0 : i32
    return %c0_i32, %c0_i32_0 : i32, i32
  }
  func.func @transform_2(%arg0: i32) -> (i32, i32) {
    %c0_i32 = arith.constant 0 : i32
    %c0_i32_0 = arith.constant 0 : i32
    %c0_i32_1 = arith.constant 0 : i32
    return %c0_i32, %c0_i32_0 : i32, i32
  }
  func.func @transform_3(%arg0: i32) -> (i32, i32) {
    %c0_i32 = arith.constant 0 : i32
    %c0_i32_0 = arith.constant 0 : i32
    %c0_i32_1 = arith.constant 0 : i32
    return %c0_i32, %c0_i32_0 : i32, i32
  }
}

module attributes {stable_mosaic.version = 11 : i64} {
  func.func @_head_kernel(%arg0: i32, %arg1: memref<16x32xf32, #tpu.memory_space<vmem>>, %arg2: memref<16x144xf32, #tpu.memory_space<vmem>>, %arg3: memref<144x32xf32, #tpu.memory_space<vmem>>, %arg4: memref<1x32xf32, #tpu.memory_space<vmem>>, %arg5: memref<32x128xf32, #tpu.memory_space<vmem>>, %arg6: memref<1x128xf32, #tpu.memory_space<vmem>>, %arg7: memref<16x128xf32, #tpu.memory_space<vmem>>) attributes {dimension_semantics = [#tpu.dimension_semantics<arbitrary>], iteration_bounds = array<i64: 1>, scalar_prefetch = 0 : i64, scratch_operands = 0 : i64, tpu.core_type = #tpu.core_type<tc>, window_params = [{pipeline_mode = #tpu.pipeline_mode<synchronous>, transform_indices = @transform_0, window_bounds = array<i64: 16, 32>}, {pipeline_mode = #tpu.pipeline_mode<synchronous>, transform_indices = @transform_1, window_bounds = array<i64: 16, 144>}, {pipeline_mode = #tpu.pipeline_mode<synchronous>, transform_indices = @transform_2, window_bounds = array<i64: 144, 32>}, {pipeline_mode = #tpu.pipeline_mode<synchronous>, transform_indices = @transform_3, window_bounds = array<i64: 1, 32>}, {pipeline_mode = #tpu.pipeline_mode<synchronous>, transform_indices = @transform_4, window_bounds = array<i64: 32, 128>}, {pipeline_mode = #tpu.pipeline_mode<synchronous>, transform_indices = @transform_5, window_bounds = array<i64: 1, 128>}, {pipeline_mode = #tpu.pipeline_mode<synchronous>, transform_indices = @transform_6, window_bounds = array<i64: 16, 128>}]} {
    %c0 = arith.constant 0 : index
    %c0_0 = arith.constant 0 : index
    %0 = vector.load %arg2[%c0, %c0_0] : memref<16x144xf32, #tpu.memory_space<vmem>>, vector<16x144xf32>
    %c0_1 = arith.constant 0 : index
    %c0_2 = arith.constant 0 : index
    %1 = vector.load %arg3[%c0_1, %c0_2] : memref<144x32xf32, #tpu.memory_space<vmem>>, vector<144x32xf32>
    %cst = arith.constant dense<0.000000e+00> : vector<16x32xf32>
    %2 = tpu.matmul %0, %1, %cst {dimension_numbers = #tpu.dot_dimension_numbers<[1], [0], [0], [1], [0, 0, 1, 1], [], []>} : vector<16x144xf32>, vector<144x32xf32>, vector<16x32xf32> -> vector<16x32xf32>
    %c0_3 = arith.constant 0 : index
    %c0_4 = arith.constant 0 : index
    %3 = vector.load %arg4[%c0_3, %c0_4] : memref<1x32xf32, #tpu.memory_space<vmem>>, vector<1x32xf32>
    %4 = vector.broadcast %3 : vector<1x32xf32> to vector<16x32xf32>
    %5 = arith.addf %2, %4 : vector<16x32xf32>
    %c0_5 = arith.constant 0 : index
    %c0_6 = arith.constant 0 : index
    %6 = vector.load %arg1[%c0_5, %c0_6] : memref<16x32xf32, #tpu.memory_space<vmem>>, vector<16x32xf32>
    %7 = arith.addf %6, %5 : vector<16x32xf32>
    %c0_7 = arith.constant 0 : index
    %c0_8 = arith.constant 0 : index
    %8 = vector.load %arg5[%c0_7, %c0_8] : memref<32x128xf32, #tpu.memory_space<vmem>>, vector<32x128xf32>
    %cst_9 = arith.constant dense<0.000000e+00> : vector<16x128xf32>
    %9 = tpu.matmul %7, %8, %cst_9 {dimension_numbers = #tpu.dot_dimension_numbers<[1], [0], [0], [1], [0, 0, 1, 1], [], []>} : vector<16x32xf32>, vector<32x128xf32>, vector<16x128xf32> -> vector<16x128xf32>
    %c0_10 = arith.constant 0 : index
    %c0_11 = arith.constant 0 : index
    %10 = vector.load %arg6[%c0_10, %c0_11] : memref<1x128xf32, #tpu.memory_space<vmem>>, vector<1x128xf32>
    %11 = vector.broadcast %10 : vector<1x128xf32> to vector<16x128xf32>
    %12 = arith.addf %9, %11 : vector<16x128xf32>
    %c0_12 = arith.constant 0 : index
    %c0_13 = arith.constant 0 : index
    %13 = vector.load %arg7[%c0_12, %c0_13] : memref<16x128xf32, #tpu.memory_space<vmem>>, vector<16x128xf32>
    tpu.vector_store %arg7[%c0_12, %c0_13], %12 {strides = array<i32>} : memref<16x128xf32, #tpu.memory_space<vmem>>, vector<16x128xf32>,
    return
  }
  func.func @transform_0(%arg0: i32) -> (i32, i32) {
    %c0_i32 = arith.constant 0 : i32
    %c0_i32_0 = arith.constant 0 : i32
    %c0_i32_1 = arith.constant 0 : i32
    return %c0_i32, %c0_i32_0 : i32, i32
  }
  func.func @transform_1(%arg0: i32) -> (i32, i32) {
    %c0_i32 = arith.constant 0 : i32
    %c0_i32_0 = arith.constant 0 : i32
    %c0_i32_1 = arith.constant 0 : i32
    return %c0_i32, %c0_i32_0 : i32, i32
  }
  func.func @transform_2(%arg0: i32) -> (i32, i32) {
    %c0_i32 = arith.constant 0 : i32
    %c0_i32_0 = arith.constant 0 : i32
    %c0_i32_1 = arith.constant 0 : i32
    return %c0_i32, %c0_i32_0 : i32, i32
  }
  func.func @transform_3(%arg0: i32) -> (i32, i32) {
    %c0_i32 = arith.constant 0 : i32
    %c0_i32_0 = arith.constant 0 : i32
    %c0_i32_1 = arith.constant 0 : i32
    return %c0_i32, %c0_i32_0 : i32, i32
  }
  func.func @transform_4(%arg0: i32) -> (i32, i32) {
    %c0_i32 = arith.constant 0 : i32
    %c0_i32_0 = arith.constant 0 : i32
    %c0_i32_1 = arith.constant 0 : i32
    return %c0_i32, %c0_i32_0 : i32, i32
  }
  func.func @transform_5(%arg0: i32) -> (i32, i32) {
    %c0_i32 = arith.constant 0 : i32
    %c0_i32_0 = arith.constant 0 : i32
    %c0_i32_1 = arith.constant 0 : i32
    return %c0_i32, %c0_i32_0 : i32, i32
  }
  func.func @transform_6(%arg0: i32) -> (i32, i32) {
    %c0_i32 = arith.constant 0 : i32
    %c0_i32_0 = arith.constant 0 : i32
    %c0_i32_1 = arith.constant 0 : i32
    return %c0_i32, %c0_i32_0 : i32, i32
  }
}

module attributes {stable_mosaic.version = 11 : i64} {
  func.func @_encoder_kernel(%arg0: i32, %arg1: memref<16x32xf32, #tpu.memory_space<vmem>>, %arg2: memref<2x8xf32, #tpu.memory_space<vmem>>, %arg3: memref<1x32xf32, #tpu.memory_space<vmem>>, %arg4: memref<1x32xf32, #tpu.memory_space<vmem>>, %arg5: memref<1x32x96xf32, #tpu.memory_space<vmem>>, %arg6: memref<1x1x96xf32, #tpu.memory_space<vmem>>, %arg7: memref<1x32x32xf32, #tpu.memory_space<vmem>>, %arg8: memref<1x1x32xf32, #tpu.memory_space<vmem>>, %arg9: memref<1x1x32xf32, #tpu.memory_space<vmem>>, %arg10: memref<1x1x32xf32, #tpu.memory_space<vmem>>, %arg11: memref<1x32x64xf32, #tpu.memory_space<vmem>>, %arg12: memref<1x1x64xf32, #tpu.memory_space<vmem>>, %arg13: memref<1x64x32xf32, #tpu.memory_space<vmem>>, %arg14: memref<1x1x32xf32, #tpu.memory_space<vmem>>, %arg15: memref<1x1x32xf32, #tpu.memory_space<vmem>>, %arg16: memref<1x1x32xf32, #tpu.memory_space<vmem>>, %arg17: memref<16x32xf32, #tpu.memory_space<vmem>>, %arg18: memref<16x32xf32, #tpu.memory_space<vmem>>) attributes {dimension_semantics = [#tpu.dimension_semantics<arbitrary>], iteration_bounds = array<i64: 2>, scalar_prefetch = 0 : i64, scratch_operands = 1 : i64, tpu.core_type = #tpu.core_type<tc>, window_params = [{pipeline_mode = #tpu.pipeline_mode<synchronous>, transform_indices = @transform_0, window_bounds = array<i64: 16, 32>}, {pipeline_mode = #tpu.pipeline_mode<synchronous>, transform_indices = @transform_1, window_bounds = array<i64: 2, 8>}, {pipeline_mode = #tpu.pipeline_mode<synchronous>, transform_indices = @transform_2, window_bounds = array<i64: 1, 32>}, {pipeline_mode = #tpu.pipeline_mode<synchronous>, transform_indices = @transform_3, window_bounds = array<i64: 1, 32>}, {transform_indices = @transform_4, window_bounds = array<i64: 1, 32, 96>}, {transform_indices = @transform_5, window_bounds = array<i64: 1, 1, 96>}, {transform_indices = @transform_6, window_bounds = array<i64: 1, 32, 32>}, {transform_indices = @transform_7, window_bounds = array<i64: 1, 1, 32>}, {transform_indices = @transform_8, window_bounds = array<i64: 1, 1, 32>}, {transform_indices = @transform_9, window_bounds = array<i64: 1, 1, 32>}, {transform_indices = @transform_10, window_bounds = array<i64: 1, 32, 64>}, {transform_indices = @transform_11, window_bounds = array<i64: 1, 1, 64>}, {transform_indices = @transform_12, window_bounds = array<i64: 1, 64, 32>}, {transform_indices = @transform_13, window_bounds = array<i64: 1, 1, 32>}, {transform_indices = @transform_14, window_bounds = array<i64: 1, 1, 32>}, {transform_indices = @transform_15, window_bounds = array<i64: 1, 1, 32>}, {pipeline_mode = #tpu.pipeline_mode<synchronous>, transform_indices = @transform_16, window_bounds = array<i64: 16, 32>}]} {
    %c0_i32 = arith.constant 0 : i32
    %0 = arith.cmpi eq, %arg0, %c0_i32 : i32
    %1 = arith.extui %0 : i1 to i32
    %c0_i32_0 = arith.constant 0 : i32
    %2 = arith.cmpi ne, %1, %c0_i32_0 : i32
    scf.if %2 {
      %c0_80 = arith.constant 0 : index
      %c0_81 = arith.constant 0 : index
      %190 = vector.load %arg1[%c0_80, %c0_81] : memref<16x32xf32, #tpu.memory_space<vmem>>, vector<16x32xf32>
      %c0_82 = arith.constant 0 : index
      %c0_83 = arith.constant 0 : index
      %191 = vector.load %arg3[%c0_82, %c0_83] : memref<1x32xf32, #tpu.memory_space<vmem>>, vector<1x32xf32>
      %c0_84 = arith.constant 0 : index
      %c0_85 = arith.constant 0 : index
      %192 = vector.load %arg4[%c0_84, %c0_85] : memref<1x32xf32, #tpu.memory_space<vmem>>, vector<1x32xf32>
      %cst_86 = arith.constant dense<0.000000e+00> : vector<16xf32>
      %193 = vector.multi_reduction <add>, %190, %cst_86 [1] : vector<16x32xf32> to vector<16xf32>
      %194 = vector.shape_cast %193 : vector<16xf32> to vector<16x1xf32>
      %cst_87 = arith.constant 3.200000e+01 : f32
      %195 = vector.broadcast %cst_87 : f32 to vector<16x1xf32>
      %196 = arith.divf %194, %195 : vector<16x1xf32>
      %197 = vector.broadcast %196 : vector<16x1xf32> to vector<16x32xf32>
      %198 = arith.subf %190, %197 : vector<16x32xf32>
      %199 = arith.mulf %198, %198 : vector<16x32xf32>
      %cst_88 = arith.constant dense<0.000000e+00> : vector<16xf32>
      %200 = vector.multi_reduction <add>, %199, %cst_88 [1] : vector<16x32xf32> to vector<16xf32>
      %201 = vector.shape_cast %200 : vector<16xf32> to vector<16x1xf32>
      %cst_89 = arith.constant 3.200000e+01 : f32
      %202 = vector.broadcast %cst_89 : f32 to vector<16x1xf32>
      %203 = arith.divf %201, %202 : vector<16x1xf32>
      %204 = vector.broadcast %196 : vector<16x1xf32> to vector<16x32xf32>
      %205 = arith.subf %190, %204 : vector<16x32xf32>
      %cst_90 = arith.constant 9.99999996E-13 : f32
      %206 = vector.broadcast %cst_90 : f32 to vector<16x1xf32>
      %207 = arith.addf %203, %206 : vector<16x1xf32>
      %208 = math.rsqrt %207 : vector<16x1xf32>
      %209 = vector.broadcast %208 : vector<16x1xf32> to vector<16x32xf32>
      %210 = arith.mulf %205, %209 : vector<16x32xf32>
      %211 = vector.broadcast %191 : vector<1x32xf32> to vector<16x32xf32>
      %212 = arith.mulf %210, %211 : vector<16x32xf32>
      %213 = vector.broadcast %192 : vector<1x32xf32> to vector<16x32xf32>
      %214 = arith.addf %212, %213 : vector<16x32xf32>
      %c0_91 = arith.constant 0 : index
      %c0_92 = arith.constant 0 : index
      %215 = vector.load %arg18[%c0_91, %c0_92] : memref<16x32xf32, #tpu.memory_space<vmem>>, vector<16x32xf32>
      tpu.vector_store %arg18[%c0_91, %c0_92], %214 {strides = array<i32>} : memref<16x32xf32, #tpu.memory_space<vmem>>, vector<16x32xf32>,
    } else {
    }
    %c0 = arith.constant 0 : index
    %c0_1 = arith.constant 0 : index
    %3 = vector.load %arg18[%c0, %c0_1] : memref<16x32xf32, #tpu.memory_space<vmem>>, vector<16x32xf32>
    %c0_2 = arith.constant 0 : index
    %c0_3 = arith.constant 0 : index
    %c0_4 = arith.constant 0 : index
    %4 = vector.load %arg5[%c0_2, %c0_3, %c0_4] : memref<1x32x96xf32, #tpu.memory_space<vmem>>, vector<1x32x96xf32>
    %5 = vector.shape_cast %4 : vector<1x32x96xf32> to vector<32x96xf32>
    %cst = arith.constant dense<0.000000e+00> : vector<16x96xf32>
    %6 = tpu.matmul %3, %5, %cst {dimension_numbers = #tpu.dot_dimension_numbers<[1], [0], [0], [1], [0, 0, 1, 1], [], []>} : vector<16x32xf32>, vector<32x96xf32>, vector<16x96xf32> -> vector<16x96xf32>
    %c0_5 = arith.constant 0 : index
    %c0_6 = arith.constant 0 : index
    %c0_7 = arith.constant 0 : index
    %7 = vector.load %arg6[%c0_5, %c0_6, %c0_7] : memref<1x1x96xf32, #tpu.memory_space<vmem>>, vector<1x1x96xf32>
    %8 = vector.shape_cast %7 : vector<1x1x96xf32> to vector<1x96xf32>
    %9 = vector.broadcast %8 : vector<1x96xf32> to vector<16x96xf32>
    %10 = arith.addf %6, %9 : vector<16x96xf32>
    %11 = vector.extract_strided_slice %10 {offsets = [0, 0], sizes = [16, 32], strides = [1, 1]} : vector<16x96xf32> to vector<16x32xf32>
    %12 = vector.extract_strided_slice %10 {offsets = [0, 32], sizes = [16, 32], strides = [1, 1]} : vector<16x96xf32> to vector<16x32xf32>
    %13 = vector.extract_strided_slice %10 {offsets = [0, 64], sizes = [16, 32], strides = [1, 1]} : vector<16x96xf32> to vector<16x32xf32>
    %c0_8 = arith.constant 0 : index
    %c0_9 = arith.constant 0 : index
    %14 = vector.load %arg2[%c0_8, %c0_9] : memref<2x8xf32, #tpu.memory_space<vmem>>, vector<2x8xf32>
    %15 = vector.extract_strided_slice %11 {offsets = [0, 0], sizes = [8, 32], strides = [1, 1]} : vector<16x32xf32> to vector<8x32xf32>
    %16 = vector.extract_strided_slice %12 {offsets = [0, 0], sizes = [8, 32], strides = [1, 1]} : vector<16x32xf32> to vector<8x32xf32>
    %17 = vector.extract_strided_slice %13 {offsets = [0, 0], sizes = [8, 32], strides = [1, 1]} : vector<16x32xf32> to vector<8x32xf32>
    %18 = vector.extract_strided_slice %14 {offsets = [0, 0], sizes = [1, 8], strides = [1, 1]} : vector<2x8xf32> to vector<1x8xf32>
    %19 = vector.extract_strided_slice %15 {offsets = [0, 0], sizes = [8, 16], strides = [1, 1]} : vector<8x32xf32> to vector<8x16xf32>
    %20 = vector.extract_strided_slice %16 {offsets = [0, 0], sizes = [8, 16], strides = [1, 1]} : vector<8x32xf32> to vector<8x16xf32>
    %21 = vector.extract_strided_slice %17 {offsets = [0, 0], sizes = [8, 16], strides = [1, 1]} : vector<8x32xf32> to vector<8x16xf32>
    %cst_10 = arith.constant dense<0.000000e+00> : vector<8x8xf32>
    %22 = tpu.matmul %19, %20, %cst_10 {dimension_numbers = #tpu.dot_dimension_numbers<[1], [1], [0], [0], [0, 0, 1, 0], [], []>} : vector<8x16xf32>, vector<8x16xf32>, vector<8x8xf32> -> vector<8x8xf32>
    %cst_11 = arith.constant 2.500000e-01 : f32
    %23 = vector.broadcast %cst_11 : f32 to vector<8x8xf32>
    %24 = arith.mulf %22, %23 : vector<8x8xf32>
    %25 = vector.broadcast %18 : vector<1x8xf32> to vector<8x8xf32>
    %26 = arith.addf %24, %25 : vector<8x8xf32>
    %cst_12 = arith.constant dense<0xFF800000> : vector<8xf32>
    %27 = vector.multi_reduction <maximumf>, %26, %cst_12 [1] : vector<8x8xf32> to vector<8xf32>
    %28 = vector.shape_cast %27 : vector<8xf32> to vector<8x1xf32>
    %29 = vector.broadcast %28 : vector<8x1xf32> to vector<8x8xf32>
    %30 = arith.subf %26, %29 : vector<8x8xf32>
    %31 = math.exp %30 : vector<8x8xf32>
    %cst_13 = arith.constant dense<0.000000e+00> : vector<8xf32>
    %32 = vector.multi_reduction <add>, %31, %cst_13 [1] : vector<8x8xf32> to vector<8xf32>
    %33 = vector.shape_cast %32 : vector<8xf32> to vector<8x1xf32>
    %34 = vector.broadcast %33 : vector<8x1xf32> to vector<8x8xf32>
    %35 = arith.divf %31, %34 : vector<8x8xf32>
    %cst_14 = arith.constant dense<0.000000e+00> : vector<8x16xf32>
    %36 = tpu.matmul %35, %21, %cst_14 {dimension_numbers = #tpu.dot_dimension_numbers<[1], [0], [0], [1], [0, 0, 1, 1], [], []>} : vector<8x8xf32>, vector<8x16xf32>, vector<8x16xf32> -> vector<8x16xf32>
    %37 = vector.extract_strided_slice %15 {offsets = [0, 16], sizes = [8, 16], strides = [1, 1]} : vector<8x32xf32> to vector<8x16xf32>
    %38 = vector.extract_strided_slice %16 {offsets = [0, 16], sizes = [8, 16], strides = [1, 1]} : vector<8x32xf32> to vector<8x16xf32>
    %39 = vector.extract_strided_slice %17 {offsets = [0, 16], sizes = [8, 16], strides = [1, 1]} : vector<8x32xf32> to vector<8x16xf32>
    %cst_15 = arith.constant dense<0.000000e+00> : vector<8x8xf32>
    %40 = tpu.matmul %37, %38, %cst_15 {dimension_numbers = #tpu.dot_dimension_numbers<[1], [1], [0], [0], [0, 0, 1, 0], [], []>} : vector<8x16xf32>, vector<8x16xf32>, vector<8x8xf32> -> vector<8x8xf32>
    %cst_16 = arith.constant 2.500000e-01 : f32
    %41 = vector.broadcast %cst_16 : f32 to vector<8x8xf32>
    %42 = arith.mulf %40, %41 : vector<8x8xf32>
    %43 = vector.broadcast %18 : vector<1x8xf32> to vector<8x8xf32>
    %44 = arith.addf %42, %43 : vector<8x8xf32>
    %cst_17 = arith.constant dense<0xFF800000> : vector<8xf32>
    %45 = vector.multi_reduction <maximumf>, %44, %cst_17 [1] : vector<8x8xf32> to vector<8xf32>
    %46 = vector.shape_cast %45 : vector<8xf32> to vector<8x1xf32>
    %47 = vector.broadcast %46 : vector<8x1xf32> to vector<8x8xf32>
    %48 = arith.subf %44, %47 : vector<8x8xf32>
    %49 = math.exp %48 : vector<8x8xf32>
    %cst_18 = arith.constant dense<0.000000e+00> : vector<8xf32>
    %50 = vector.multi_reduction <add>, %49, %cst_18 [1] : vector<8x8xf32> to vector<8xf32>
    %51 = vector.shape_cast %50 : vector<8xf32> to vector<8x1xf32>
    %52 = vector.broadcast %51 : vector<8x1xf32> to vector<8x8xf32>
    %53 = arith.divf %49, %52 : vector<8x8xf32>
    %cst_19 = arith.constant dense<0.000000e+00> : vector<8x16xf32>
    %54 = tpu.matmul %53, %39, %cst_19 {dimension_numbers = #tpu.dot_dimension_numbers<[1], [0], [0], [1], [0, 0, 1, 1], [], []>} : vector<8x8xf32>, vector<8x16xf32>, vector<8x16xf32> -> vector<8x16xf32>
    %55 = tpu.concatenate %36, %54 in 1 : vector<8x16xf32>, vector<8x16xf32> -> vector<8x32xf32>
    %56 = vector.extract_strided_slice %11 {offsets = [8, 0], sizes = [8, 32], strides = [1, 1]} : vector<16x32xf32> to vector<8x32xf32>
    %57 = vector.extract_strided_slice %12 {offsets = [8, 0], sizes = [8, 32], strides = [1, 1]} : vector<16x32xf32> to vector<8x32xf32>
    %58 = vector.extract_strided_slice %13 {offsets = [8, 0], sizes = [8, 32], strides = [1, 1]} : vector<16x32xf32> to vector<8x32xf32>
    %59 = vector.extract_strided_slice %14 {offsets = [1, 0], sizes = [1, 8], strides = [1, 1]} : vector<2x8xf32> to vector<1x8xf32>
    %60 = vector.extract_strided_slice %56 {offsets = [0, 0], sizes = [8, 16], strides = [1, 1]} : vector<8x32xf32> to vector<8x16xf32>
    %61 = vector.extract_strided_slice %57 {offsets = [0, 0], sizes = [8, 16], strides = [1, 1]} : vector<8x32xf32> to vector<8x16xf32>
    %62 = vector.extract_strided_slice %58 {offsets = [0, 0], sizes = [8, 16], strides = [1, 1]} : vector<8x32xf32> to vector<8x16xf32>
    %cst_20 = arith.constant dense<0.000000e+00> : vector<8x8xf32>
    %63 = tpu.matmul %60, %61, %cst_20 {dimension_numbers = #tpu.dot_dimension_numbers<[1], [1], [0], [0], [0, 0, 1, 0], [], []>} : vector<8x16xf32>, vector<8x16xf32>, vector<8x8xf32> -> vector<8x8xf32>
    %cst_21 = arith.constant 2.500000e-01 : f32
    %64 = vector.broadcast %cst_21 : f32 to vector<8x8xf32>
    %65 = arith.mulf %63, %64 : vector<8x8xf32>
    %66 = vector.broadcast %59 : vector<1x8xf32> to vector<8x8xf32>
    %67 = arith.addf %65, %66 : vector<8x8xf32>
    %cst_22 = arith.constant dense<0xFF800000> : vector<8xf32>
    %68 = vector.multi_reduction <maximumf>, %67, %cst_22 [1] : vector<8x8xf32> to vector<8xf32>
    %69 = vector.shape_cast %68 : vector<8xf32> to vector<8x1xf32>
    %70 = vector.broadcast %69 : vector<8x1xf32> to vector<8x8xf32>
    %71 = arith.subf %67, %70 : vector<8x8xf32>
    %72 = math.exp %71 : vector<8x8xf32>
    %cst_23 = arith.constant dense<0.000000e+00> : vector<8xf32>
    %73 = vector.multi_reduction <add>, %72, %cst_23 [1] : vector<8x8xf32> to vector<8xf32>
    %74 = vector.shape_cast %73 : vector<8xf32> to vector<8x1xf32>
    %75 = vector.broadcast %74 : vector<8x1xf32> to vector<8x8xf32>
    %76 = arith.divf %72, %75 : vector<8x8xf32>
    %cst_24 = arith.constant dense<0.000000e+00> : vector<8x16xf32>
    %77 = tpu.matmul %76, %62, %cst_24 {dimension_numbers = #tpu.dot_dimension_numbers<[1], [0], [0], [1], [0, 0, 1, 1], [], []>} : vector<8x8xf32>, vector<8x16xf32>, vector<8x16xf32> -> vector<8x16xf32>
    %78 = vector.extract_strided_slice %56 {offsets = [0, 16], sizes = [8, 16], strides = [1, 1]} : vector<8x32xf32> to vector<8x16xf32>
    %79 = vector.extract_strided_slice %57 {offsets = [0, 16], sizes = [8, 16], strides = [1, 1]} : vector<8x32xf32> to vector<8x16xf32>
    %80 = vector.extract_strided_slice %58 {offsets = [0, 16], sizes = [8, 16], strides = [1, 1]} : vector<8x32xf32> to vector<8x16xf32>
    %cst_25 = arith.constant dense<0.000000e+00> : vector<8x8xf32>
    %81 = tpu.matmul %78, %79, %cst_25 {dimension_numbers = #tpu.dot_dimension_numbers<[1], [1], [0], [0], [0, 0, 1, 0], [], []>} : vector<8x16xf32>, vector<8x16xf32>, vector<8x8xf32> -> vector<8x8xf32>
    %cst_26 = arith.constant 2.500000e-01 : f32
    %82 = vector.broadcast %cst_26 : f32 to vector<8x8xf32>
    %83 = arith.mulf %81, %82 : vector<8x8xf32>
    %84 = vector.broadcast %59 : vector<1x8xf32> to vector<8x8xf32>
    %85 = arith.addf %83, %84 : vector<8x8xf32>
    %cst_27 = arith.constant dense<0xFF800000> : vector<8xf32>
    %86 = vector.multi_reduction <maximumf>, %85, %cst_27 [1] : vector<8x8xf32> to vector<8xf32>
    %87 = vector.shape_cast %86 : vector<8xf32> to vector<8x1xf32>
    %88 = vector.broadcast %87 : vector<8x1xf32> to vector<8x8xf32>
    %89 = arith.subf %85, %88 : vector<8x8xf32>
    %90 = math.exp %89 : vector<8x8xf32>
    %cst_28 = arith.constant dense<0.000000e+00> : vector<8xf32>
    %91 = vector.multi_reduction <add>, %90, %cst_28 [1] : vector<8x8xf32> to vector<8xf32>
    %92 = vector.shape_cast %91 : vector<8xf32> to vector<8x1xf32>
    %93 = vector.broadcast %92 : vector<8x1xf32> to vector<8x8xf32>
    %94 = arith.divf %90, %93 : vector<8x8xf32>
    %cst_29 = arith.constant dense<0.000000e+00> : vector<8x16xf32>
    %95 = tpu.matmul %94, %80, %cst_29 {dimension_numbers = #tpu.dot_dimension_numbers<[1], [0], [0], [1], [0, 0, 1, 1], [], []>} : vector<8x8xf32>, vector<8x16xf32>, vector<8x16xf32> -> vector<8x16xf32>
    %96 = tpu.concatenate %77, %95 in 1 : vector<8x16xf32>, vector<8x16xf32> -> vector<8x32xf32>
    %97 = tpu.concatenate %55, %96 in 0 : vector<8x32xf32>, vector<8x32xf32> -> vector<16x32xf32>
    %c0_30 = arith.constant 0 : index
    %c0_31 = arith.constant 0 : index
    %c0_32 = arith.constant 0 : index
    %98 = vector.load %arg7[%c0_30, %c0_31, %c0_32] : memref<1x32x32xf32, #tpu.memory_space<vmem>>, vector<1x32x32xf32>
    %99 = vector.shape_cast %98 : vector<1x32x32xf32> to vector<32x32xf32>
    %cst_33 = arith.constant dense<0.000000e+00> : vector<16x32xf32>
    %100 = tpu.matmul %97, %99, %cst_33 {dimension_numbers = #tpu.dot_dimension_numbers<[1], [0], [0], [1], [0, 0, 1, 1], [], []>} : vector<16x32xf32>, vector<32x32xf32>, vector<16x32xf32> -> vector<16x32xf32>
    %c0_34 = arith.constant 0 : index
    %c0_35 = arith.constant 0 : index
    %c0_36 = arith.constant 0 : index
    %101 = vector.load %arg8[%c0_34, %c0_35, %c0_36] : memref<1x1x32xf32, #tpu.memory_space<vmem>>, vector<1x1x32xf32>
    %102 = vector.shape_cast %101 : vector<1x1x32xf32> to vector<1x32xf32>
    %103 = vector.broadcast %102 : vector<1x32xf32> to vector<16x32xf32>
    %104 = arith.addf %100, %103 : vector<16x32xf32>
    %105 = arith.addf %104, %3 : vector<16x32xf32>
    %c0_37 = arith.constant 0 : index
    %c0_38 = arith.constant 0 : index
    %c0_39 = arith.constant 0 : index
    %106 = vector.load %arg9[%c0_37, %c0_38, %c0_39] : memref<1x1x32xf32, #tpu.memory_space<vmem>>, vector<1x1x32xf32>
    %107 = vector.shape_cast %106 : vector<1x1x32xf32> to vector<1x32xf32>
    %c0_40 = arith.constant 0 : index
    %c0_41 = arith.constant 0 : index
    %c0_42 = arith.constant 0 : index
    %108 = vector.load %arg10[%c0_40, %c0_41, %c0_42] : memref<1x1x32xf32, #tpu.memory_space<vmem>>, vector<1x1x32xf32>
    %109 = vector.shape_cast %108 : vector<1x1x32xf32> to vector<1x32xf32>
    %cst_43 = arith.constant dense<0.000000e+00> : vector<16xf32>
    %110 = vector.multi_reduction <add>, %105, %cst_43 [1] : vector<16x32xf32> to vector<16xf32>
    %111 = vector.shape_cast %110 : vector<16xf32> to vector<16x1xf32>
    %cst_44 = arith.constant 3.200000e+01 : f32
    %112 = vector.broadcast %cst_44 : f32 to vector<16x1xf32>
    %113 = arith.divf %111, %112 : vector<16x1xf32>
    %114 = vector.broadcast %113 : vector<16x1xf32> to vector<16x32xf32>
    %115 = arith.subf %105, %114 : vector<16x32xf32>
    %116 = arith.mulf %115, %115 : vector<16x32xf32>
    %cst_45 = arith.constant dense<0.000000e+00> : vector<16xf32>
    %117 = vector.multi_reduction <add>, %116, %cst_45 [1] : vector<16x32xf32> to vector<16xf32>
    %118 = vector.shape_cast %117 : vector<16xf32> to vector<16x1xf32>
    %cst_46 = arith.constant 3.200000e+01 : f32
    %119 = vector.broadcast %cst_46 : f32 to vector<16x1xf32>
    %120 = arith.divf %118, %119 : vector<16x1xf32>
    %121 = vector.broadcast %113 : vector<16x1xf32> to vector<16x32xf32>
    %122 = arith.subf %105, %121 : vector<16x32xf32>
    %cst_47 = arith.constant 9.99999996E-13 : f32
    %123 = vector.broadcast %cst_47 : f32 to vector<16x1xf32>
    %124 = arith.addf %120, %123 : vector<16x1xf32>
    %125 = math.rsqrt %124 : vector<16x1xf32>
    %126 = vector.broadcast %125 : vector<16x1xf32> to vector<16x32xf32>
    %127 = arith.mulf %122, %126 : vector<16x32xf32>
    %128 = vector.broadcast %107 : vector<1x32xf32> to vector<16x32xf32>
    %129 = arith.mulf %127, %128 : vector<16x32xf32>
    %130 = vector.broadcast %109 : vector<1x32xf32> to vector<16x32xf32>
    %131 = arith.addf %129, %130 : vector<16x32xf32>
    %c0_48 = arith.constant 0 : index
    %c0_49 = arith.constant 0 : index
    %c0_50 = arith.constant 0 : index
    %132 = vector.load %arg11[%c0_48, %c0_49, %c0_50] : memref<1x32x64xf32, #tpu.memory_space<vmem>>, vector<1x32x64xf32>
    %133 = vector.shape_cast %132 : vector<1x32x64xf32> to vector<32x64xf32>
    %cst_51 = arith.constant dense<0.000000e+00> : vector<16x64xf32>
    %134 = tpu.matmul %131, %133, %cst_51 {dimension_numbers = #tpu.dot_dimension_numbers<[1], [0], [0], [1], [0, 0, 1, 1], [], []>} : vector<16x32xf32>, vector<32x64xf32>, vector<16x64xf32> -> vector<16x64xf32>
    %c0_52 = arith.constant 0 : index
    %c0_53 = arith.constant 0 : index
    %c0_54 = arith.constant 0 : index
    %135 = vector.load %arg12[%c0_52, %c0_53, %c0_54] : memref<1x1x64xf32, #tpu.memory_space<vmem>>, vector<1x1x64xf32>
    %136 = vector.shape_cast %135 : vector<1x1x64xf32> to vector<1x64xf32>
    %137 = vector.broadcast %136 : vector<1x64xf32> to vector<16x64xf32>
    %138 = arith.addf %134, %137 : vector<16x64xf32>
    %139 = arith.mulf %138, %138 : vector<16x64xf32>
    %140 = arith.mulf %138, %139 : vector<16x64xf32>
    %cst_55 = arith.constant 4.471500e-02 : f32
    %141 = vector.broadcast %cst_55 : f32 to vector<16x64xf32>
    %142 = arith.mulf %141, %140 : vector<16x64xf32>
    %143 = arith.addf %138, %142 : vector<16x64xf32>
    %cst_56 = arith.constant 0.797884583 : f32
    %144 = vector.broadcast %cst_56 : f32 to vector<16x64xf32>
    %145 = arith.mulf %144, %143 : vector<16x64xf32>
    %146 = math.tanh %145 : vector<16x64xf32>
    %cst_57 = arith.constant 1.000000e+00 : f32
    %147 = vector.broadcast %cst_57 : f32 to vector<16x64xf32>
    %148 = arith.addf %147, %146 : vector<16x64xf32>
    %cst_58 = arith.constant 5.000000e-01 : f32
    %149 = vector.broadcast %cst_58 : f32 to vector<16x64xf32>
    %150 = arith.mulf %149, %148 : vector<16x64xf32>
    %151 = arith.mulf %138, %150 : vector<16x64xf32>
    %c0_59 = arith.constant 0 : index
    %c0_60 = arith.constant 0 : index
    %c0_61 = arith.constant 0 : index
    %152 = vector.load %arg13[%c0_59, %c0_60, %c0_61] : memref<1x64x32xf32, #tpu.memory_space<vmem>>, vector<1x64x32xf32>
    %153 = vector.shape_cast %152 : vector<1x64x32xf32> to vector<64x32xf32>
    %cst_62 = arith.constant dense<0.000000e+00> : vector<16x32xf32>
    %154 = tpu.matmul %151, %153, %cst_62 {dimension_numbers = #tpu.dot_dimension_numbers<[1], [0], [0], [1], [0, 0, 1, 1], [], []>} : vector<16x64xf32>, vector<64x32xf32>, vector<16x32xf32> -> vector<16x32xf32>
    %c0_63 = arith.constant 0 : index
    %c0_64 = arith.constant 0 : index
    %c0_65 = arith.constant 0 : index
    %155 = vector.load %arg14[%c0_63, %c0_64, %c0_65] : memref<1x1x32xf32, #tpu.memory_space<vmem>>, vector<1x1x32xf32>
    %156 = vector.shape_cast %155 : vector<1x1x32xf32> to vector<1x32xf32>
    %157 = vector.broadcast %156 : vector<1x32xf32> to vector<16x32xf32>
    %158 = arith.addf %154, %157 : vector<16x32xf32>
    %159 = arith.addf %158, %131 : vector<16x32xf32>
    %c0_66 = arith.constant 0 : index
    %c0_67 = arith.constant 0 : index
    %c0_68 = arith.constant 0 : index
    %160 = vector.load %arg15[%c0_66, %c0_67, %c0_68] : memref<1x1x32xf32, #tpu.memory_space<vmem>>, vector<1x1x32xf32>
    %161 = vector.shape_cast %160 : vector<1x1x32xf32> to vector<1x32xf32>
    %c0_69 = arith.constant 0 : index
    %c0_70 = arith.constant 0 : index
    %c0_71 = arith.constant 0 : index
    %162 = vector.load %arg16[%c0_69, %c0_70, %c0_71] : memref<1x1x32xf32, #tpu.memory_space<vmem>>, vector<1x1x32xf32>
    %163 = vector.shape_cast %162 : vector<1x1x32xf32> to vector<1x32xf32>
    %cst_72 = arith.constant dense<0.000000e+00> : vector<16xf32>
    %164 = vector.multi_reduction <add>, %159, %cst_72 [1] : vector<16x32xf32> to vector<16xf32>
    %165 = vector.shape_cast %164 : vector<16xf32> to vector<16x1xf32>
    %cst_73 = arith.constant 3.200000e+01 : f32
    %166 = vector.broadcast %cst_73 : f32 to vector<16x1xf32>
    %167 = arith.divf %165, %166 : vector<16x1xf32>
    %168 = vector.broadcast %167 : vector<16x1xf32> to vector<16x32xf32>
    %169 = arith.subf %159, %168 : vector<16x32xf32>
    %170 = arith.mulf %169, %169 : vector<16x32xf32>
    %cst_74 = arith.constant dense<0.000000e+00> : vector<16xf32>
    %171 = vector.multi_reduction <add>, %170, %cst_74 [1] : vector<16x32xf32> to vector<16xf32>
    %172 = vector.shape_cast %171 : vector<16xf32> to vector<16x1xf32>
    %cst_75 = arith.constant 3.200000e+01 : f32
    %173 = vector.broadcast %cst_75 : f32 to vector<16x1xf32>
    %174 = arith.divf %172, %173 : vector<16x1xf32>
    %175 = vector.broadcast %167 : vector<16x1xf32> to vector<16x32xf32>
    %176 = arith.subf %159, %175 : vector<16x32xf32>
    %cst_76 = arith.constant 9.99999996E-13 : f32
    %177 = vector.broadcast %cst_76 : f32 to vector<16x1xf32>
    %178 = arith.addf %174, %177 : vector<16x1xf32>
    %179 = math.rsqrt %178 : vector<16x1xf32>
    %180 = vector.broadcast %179 : vector<16x1xf32> to vector<16x32xf32>
    %181 = arith.mulf %176, %180 : vector<16x32xf32>
    %182 = vector.broadcast %161 : vector<1x32xf32> to vector<16x32xf32>
    %183 = arith.mulf %181, %182 : vector<16x32xf32>
    %184 = vector.broadcast %163 : vector<1x32xf32> to vector<16x32xf32>
    %185 = arith.addf %183, %184 : vector<16x32xf32>
    %c0_77 = arith.constant 0 : index
    %c0_78 = arith.constant 0 : index
    %186 = vector.load %arg18[%c0_77, %c0_78] : memref<16x32xf32, #tpu.memory_space<vmem>>, vector<16x32xf32>
    tpu.vector_store %arg18[%c0_77, %c0_78], %185 {strides = array<i32>} : memref<16x32xf32, #tpu.memory_space<vmem>>, vector<16x32xf32>,
    %c1_i32 = arith.constant 1 : i32
    %187 = arith.cmpi eq, %arg0, %c1_i32 : i32
    %188 = arith.extui %187 : i1 to i32
    %c0_i32_79 = arith.constant 0 : i32
    %189 = arith.cmpi ne, %188, %c0_i32_79 : i32
    scf.if %189 {
      %c0_80 = arith.constant 0 : index
      %c0_81 = arith.constant 0 : index
      %190 = vector.load %arg17[%c0_80, %c0_81] : memref<16x32xf32, #tpu.memory_space<vmem>>, vector<16x32xf32>
      tpu.vector_store %arg17[%c0_80, %c0_81], %185 {strides = array<i32>} : memref<16x32xf32, #tpu.memory_space<vmem>>, vector<16x32xf32>,
    } else {
    }
    return
  }
  func.func @transform_0(%arg0: i32) -> (i32, i32) {
    %c0_i32 = arith.constant 0 : i32
    %c0_i32_0 = arith.constant 0 : i32
    %c0_i32_1 = arith.constant 0 : i32
    return %c0_i32, %c0_i32_0 : i32, i32
  }
  func.func @transform_1(%arg0: i32) -> (i32, i32) {
    %c0_i32 = arith.constant 0 : i32
    %c0_i32_0 = arith.constant 0 : i32
    %c0_i32_1 = arith.constant 0 : i32
    return %c0_i32, %c0_i32_0 : i32, i32
  }
  func.func @transform_2(%arg0: i32) -> (i32, i32) {
    %c0_i32 = arith.constant 0 : i32
    %c0_i32_0 = arith.constant 0 : i32
    %c0_i32_1 = arith.constant 0 : i32
    return %c0_i32, %c0_i32_0 : i32, i32
  }
  func.func @transform_3(%arg0: i32) -> (i32, i32) {
    %c0_i32 = arith.constant 0 : i32
    %c0_i32_0 = arith.constant 0 : i32
    %c0_i32_1 = arith.constant 0 : i32
    return %c0_i32, %c0_i32_0 : i32, i32
  }
  func.func @transform_4(%arg0: i32) -> (i32, i32, i32) {
    %c0_i32 = arith.constant 0 : i32
    %c0_i32_0 = arith.constant 0 : i32
    %c0_i32_1 = arith.constant 0 : i32
    return %arg0, %c0_i32, %c0_i32_0 : i32, i32, i32
  }
  func.func @transform_5(%arg0: i32) -> (i32, i32, i32) {
    %c0_i32 = arith.constant 0 : i32
    %c0_i32_0 = arith.constant 0 : i32
    %c0_i32_1 = arith.constant 0 : i32
    return %arg0, %c0_i32, %c0_i32_0 : i32, i32, i32
  }
  func.func @transform_6(%arg0: i32) -> (i32, i32, i32) {
    %c0_i32 = arith.constant 0 : i32
    %c0_i32_0 = arith.constant 0 : i32
    %c0_i32_1 = arith.constant 0 : i32
    return %arg0, %c0_i32, %c0_i32_0 : i32, i32, i32
  }
  func.func @transform_7(%arg0: i32) -> (i32, i32, i32) {
    %c0_i32 = arith.constant 0 : i32
    %c0_i32_0 = arith.constant 0 : i32
    %c0_i32_1 = arith.constant 0 : i32
    return %arg0, %c0_i32, %c0_i32_0 : i32, i32, i32
  }
  func.func @transform_8(%arg0: i32) -> (i32, i32, i32) {
    %c0_i32 = arith.constant 0 : i32
    %c0_i32_0 = arith.constant 0 : i32
    %c0_i32_1 = arith.constant 0 : i32
    return %arg0, %c0_i32, %c0_i32_0 : i32, i32, i32
  }
  func.func @transform_9(%arg0: i32) -> (i32, i32, i32) {
    %c0_i32 = arith.constant 0 : i32
    %c0_i32_0 = arith.constant 0 : i32
    %c0_i32_1 = arith.constant 0 : i32
    return %arg0, %c0_i32, %c0_i32_0 : i32, i32, i32
  }
  func.func @transform_10(%arg0: i32) -> (i32, i32, i32) {
    %c0_i32 = arith.constant 0 : i32
    %c0_i32_0 = arith.constant 0 : i32
    %c0_i32_1 = arith.constant 0 : i32
    return %arg0, %c0_i32, %c0_i32_0 : i32, i32, i32
  }
  func.func @transform_11(%arg0: i32) -> (i32, i32, i32) {
    %c0_i32 = arith.constant 0 : i32
    %c0_i32_0 = arith.constant 0 : i32
    %c0_i32_1 = arith.constant 0 : i32
    return %arg0, %c0_i32, %c0_i32_0 : i32, i32, i32
  }
  func.func @transform_12(%arg0: i32) -> (i32, i32, i32) {
    %c0_i32 = arith.constant 0 : i32
    %c0_i32_0 = arith.constant 0 : i32
    %c0_i32_1 = arith.constant 0 : i32
    return %arg0, %c0_i32, %c0_i32_0 : i32, i32, i32
  }
  func.func @transform_13(%arg0: i32) -> (i32, i32, i32) {
    %c0_i32 = arith.constant 0 : i32
    %c0_i32_0 = arith.constant 0 : i32
    %c0_i32_1 = arith.constant 0 : i32
    return %arg0, %c0_i32, %c0_i32_0 : i32, i32, i32
  }
  func.func @transform_14(%arg0: i32) -> (i32, i32, i32) {
    %c0_i32 = arith.constant 0 : i32
    %c0_i32_0 = arith.constant 0 : i32
    %c0_i32_1 = arith.constant 0 : i32
    return %arg0, %c0_i32, %c0_i32_0 : i32, i32, i32
  }
  func.func @transform_15(%arg0: i32) -> (i32, i32, i32) {
    %c0_i32 = arith.constant 0 : i32
    %c0_i32_0 = arith.constant 0 : i32
    %c0_i32_1 = arith.constant 0 : i32
    return %arg0, %c0_i32, %c0_i32_0 : i32, i32, i32
  }
  func.func @transform_16(%arg0: i32) -> (i32, i32) {
    %c0_i32 = arith.constant 0 : i32
    %c0_i32_0 = arith.constant 0 : i32
    %c0_i32_1 = arith.constant 0 : i32
    return %c0_i32, %c0_i32_0 : i32, i32
  }
}

</mosaic_0001>

<bundles_post_ra>
// kernel: forward.5
= control target key start
LH: loop header
LB: loop body
LE: loop exit
PB: predicated region body
PF: predicated region fallthrough
CT: control target
= control target key end

     0   :  { %vm41_vm0 = vcmask 1042432   ;;  %v238_v3 = vmov 0.0   ;;  %v239_v8 = vmov 0   ;;  %vm240_vm1 = vmmov 1   ;;  %s340_s1 = inlined_call_operand.vmem [shape: f32[27,512], index: 1, kind: input, shape index: {}]   ;;  %s341_s2 = inlined_call_operand.vmem [shape: f32[8,1], index: 2, kind: input, shape index: {}]   ;;  %s342_s0 = inlined_call_operand.vmem [shape: f32[8,27], index: 0, kind: input, shape index: {}]   ;;  %s343_s3 = inlined_call_operand.vmem [shape: f32[8,512], index: 3, kind: output, shape index: {}]  }
   0x1   :  { %v16_v0 = vld [vmem:[%s340_s1 + $0x8] sm:$0xff]  ;;  %v18_v2 = vld [vmem:[%s340_s1 + $0x18] sm:$0xff]  ;;  %118 = vmatprep.mubr.f32.mxu0 %v238_v3  ;;  %189 = vmatprep.mubr.f32.mxu1 %v238_v3  ;;  %v15_v6 = vld [vmem:[%s340_s1] sm:$0xff]  ;;  %vm37_vm3 = vcmask 220160  }
   0x2   :  { %v20_v1 = vld [vmem:[%s340_s1 + $0x28] sm:$0xff]  ;;  %v22_v5 = vld [vmem:[%s340_s1 + $0x38] sm:$0xff]  ;;  %v19_v7 = vld [vmem:[%s340_s1 + $0x20] sm:$0xff]  ;;  %237 = vset.pattern.permute.xlu0 %v239_v8 }
   0x3   :  { %v214_v4 = vpack.c.bf16 %v20_v1, %v16_v0  ;;  %v224_v9 = vpack.c.bf16 %v22_v5, %v18_v2  ;;  %v216_v10 = vpack.c.bf16 %v19_v7, %v15_v6  ;;  %v17_v11 = vld [vmem:[%s340_s1 + $0x10] sm:$0xff]  ;;  %v24_v13 = vld [vmem:[%s340_s1 + $0x48] sm:$0xff]  ;;  %vm292_vm2 = vmpackc.low %vm41_vm0, %vm240_vm1 }
   0x4   :  { %v21_v12 = vld [vmem:[%s340_s1 + $0x30] sm:$0xff]  ;;  %v28_v15 = vld [vmem:[%s340_s1 + $0x68] sm:$0x7]  ;;  %v26_v17 = vld [vmem:[%s340_s1 + $0x58] sm:$0xff] }
   0x5   :  { %215 = vmatprep.subr.bf16.mxu0 %v214_v4  ;;  %v226_v14 = vpack.c.bf16 %v21_v12, %v17_v11  ;;  %225 = vmatprep.subr.bf16.mxu1 %v224_v9  ;;  %v218_v18 = vpack.c.bf16 %v28_v15, %v24_v13  ;;  %v30_v19 = vld [vmem:[%s340_s1 + $0x78] sm:$0x7]  ;;  %v23_v20 = vld [vmem:[%s340_s1 + $0x40] sm:$0xff]  ;;  %v25_v24 = vld [vmem:[%s340_s1 + $0x50] sm:$0xff] }
   0x6   :  { %217 = vmatpush1.bf16.msra.mxu0 %v216_v10  ;;  %v27_v21 = vld [vmem:[%s340_s1 + $0x60] sm:$0x7]  ;;  %v228_v22 = vpack.c.bf16 %v30_v19, %v26_v17  ;;  %v29_v25 = vld [vmem:[%s340_s1 + $0x70] sm:$0x7] }
   0x7   :  { %227 = vmatpush1.bf16.msra.mxu1 %v226_v14  ;;  %v221_v23 = vpack.c.bf16 %v27_v21, %v23_v20  ;;  %220 = vmatprep.subr.msk.bf16.mxu0 %vm292_vm2, %v218_v18  ;;  %v231_v26 = vpack.c.bf16 %v29_v25, %v25_v24  ;;  %v31_v27 = vld [vmem:[%s341_s2] sm:$0xff] }
   0x8   :  { %230 = vmatprep.subr.msk.bf16.mxu1 %vm292_vm2, %v228_v22  ;;  %34 = vperm.xlu0 %237, %v31_v27   ;;  %v14_v28 = vld [vmem:[%s342_s0] sm:$0xff] }
   0xa   :  { %223 = vmatpush1.bf16.msk.msra.mxu0 %vm292_vm2, %v221_v23 }
   0xb   :  { %233 = vmatpush1.bf16.msk.msra.mxu1 %vm292_vm2, %v231_v26 }
   0xd   :  { %210 = vmatmul.mubr.msk.f32.vlgmr.msra.gmra.mrb[0].mxu0 %vm37_vm3, %v14_v28 }
   0xe   :  { %213 = vmatmul.mubr.msk.f32.vlgmr.msra.gmra.mrb[0].mxu1 %vm37_vm3, %v14_v28 }
  0x87   :  { %v35_v29 = vpop.permute.xlu0 %34 }
  0xe0   :  { %v120_v30 = vpop.f32.mrb[0].mxu0 }
  0xe1   :  { %v121_v31 = vadd.f32 %v120_v30, %v35_v29  ;;  %v191_v32 = vpop.f32.mrb[0].mxu1  ;;  %v122_v33 = vpop.f32.mrb[1].mxu0 }
  0xe2   :  { %v192_v34 = vadd.f32 %v191_v32, %v35_v29  ;;  %v123_v35 = vadd.f32 %v122_v33, %v35_v29  ;;  %v193_v36 = vpop.f32.mrb[1].mxu1 }
  0xe3   :  { %v196_v37 = vmax.f32 %v121_v31, 0.0  ;;  %v194_v38 = vadd.f32 %v193_v36, %v35_v29 }
  0xe4   :  { %v198_v39 = vmax.f32 %v192_v34, 0.0  ;;  %v197_v40 = vmax.f32 %v123_v35, 0.0 }
  0xe5   :  { %200 = vst [vmem:[%s343_s3] sm:$0xff] %v196_v37  ;;  %v199_v41 = vmax.f32 %v194_v38, 0.0 }
  0xe6   :  { %202 = vst [vmem:[%s343_s3 + $0x10] sm:$0xff] %v198_v39  ;;  %201 = vst [vmem:[%s343_s3 + $0x8] sm:$0xff] %v197_v40 }
  0xe7   :  { %203 = vst [vmem:[%s343_s3 + $0x18] sm:$0xff] %v199_v41 }

// kernel: forward.6
= control target key start
LH: loop header
LB: loop body
LE: loop exit
PB: predicated region body
PF: predicated region fallthrough
CT: control target
= control target key end

     0   :  { %v179_v3 = vmov 0   ;;  %vm37_vm0 = vcmask 588800   ;;  %s247_s1 = inlined_call_operand.vmem [shape: f32[72,128], index: 1, kind: input, shape index: {}]   ;;  %s248_s0 = inlined_call_operand.vmem [shape: f32[16,72], index: 0, kind: input, shape index: {}]   ;;  %s249_s2 = inlined_call_operand.vmem [shape: f32[16,1], index: 2, kind: input, shape index: {}]   ;;  %s250_s3 = inlined_call_operand.vmem [shape: f32[16,128], index: 3, kind: output, shape index: {}]  }
   0x1   :  { %v16_v0 = vld [vmem:[%s247_s1] sm:$0xff]  ;;  %v17_v1 = vld [vmem:[%s247_s1 + $0x8] sm:$0xff]  ;;  %v18_v2 = vld [vmem:[%s247_s1 + $0x10] sm:$0xff]  ;;  %178 = vset.pattern.permute.xlu0 %v179_v3 }
   0x2   :  { %v161_v4 = vpack.c.bf16 %v17_v1, %v16_v0  ;;  %v19_v5 = vld [vmem:[%s247_s1 + $0x18] sm:$0xff]  ;;  %v20_v7 = vld [vmem:[%s247_s1 + $0x20] sm:$0xff]  ;;  %v21_v8 = vld [vmem:[%s247_s1 + $0x28] sm:$0xff] }
   0x3   :  { %v165_v6 = vpack.c.bf16 %v19_v5, %v18_v2  ;;  %v14_v9 = vld [vmem:[%s248_s0] sm:$0xff]  ;;  %v169_v11 = vpack.c.bf16 %v21_v8, %v20_v7  ;;  %v22_v12 = vld [vmem:[%s247_s1 + $0x30] sm:$0xff]  ;;  %v23_v13 = vld [vmem:[%s247_s1 + $0x38] sm:$0xff] }
   0x4   :  { %162 = vmatprep.subr.bf16.mxu0 %v161_v4  ;;  %v25_v10 = vld [vmem:[%s249_s2] sm:$0xff]  ;;  %158 = vmatprep.mubr.msk.f32.mxu0 %vm37_vm0, %v14_v9  ;;  %v26_v14 = vld [vmem:[%s249_s2 + $0x8] sm:$0xff]  ;;  %v173_v15 = vpack.c.bf16 %v23_v13, %v22_v12 }
   0x5   :  { %164 = vmatpush3.bf16.msra.mxu0 %v161_v4  ;;  %29 = vperm.xlu0 %178, %v25_v10   ;;  %v24_v16 = vld [vmem:[%s247_s1 + $0x40] sm:$0xff]  ;;  %v15_v17 = vld [vmem:[%s248_s0 + $0x8] sm:$0xff] }
   0x6   :  { %166 = vmatprep.subr.bf16.mxu0 %v165_v6 }
   0x9   :  { %168 = vmatpush3.bf16.msra.mxu0 %v165_v6  ;;  %34 = vperm.xlu0 %178, %v26_v14  }
   0xa   :  { %170 = vmatprep.subr.bf16.mxu0 %v169_v11 }
   0xd   :  { %172 = vmatpush3.bf16.msra.mxu0 %v169_v11 }
   0xe   :  { %174 = vmatprep.subr.bf16.mxu0 %v173_v15 }
  0x11   :  { %176 = vmatpush3.bf16.msra.mxu0 %v173_v15 }
  0x12   :  { %156 = vmatprep.subr.mxu0 %v24_v16 }
  0x15   :  { %157 = vmatpush3.msra.mxu0 %v24_v16 }
  0x16   :  { %159 = vmatmul.mubr.msk.f32.vlgmr.msra.gmra.mrb[0].mxu0 %vm37_vm0, %v15_v17 }
  0x84   :  { %v30_v18 = vpop.permute.xlu0 %29 }
  0x88   :  { %v35_v19 = vpop.permute.xlu0 %34 }
  0xe9   :  { %v160_v20 = vpop.f32.mrb[0].mxu0 }
  0xea   :  { %v116_v21 = vadd.f32 %v160_v20, %v35_v19  ;;  %v110_v22 = vpop.f32.mrb[1].mxu0 }
  0xeb   :  { %v111_v23 = vadd.f32 %v110_v22, %v30_v18 }
  0xec   :  { %v120_v24 = vmax.f32 %v116_v21, 0.0 }
  0xed   :  { %v119_v25 = vmax.f32 %v111_v23, 0.0 }
  0xee   :  { %122 = vst [vmem:[%s250_s3 + $0x8] sm:$0xff] %v120_v24 }
  0xef   :  { %121 = vst [vmem:[%s250_s3] sm:$0xff] %v119_v25 }

// kernel: forward.7
= control target key start
LH: loop header
LB: loop body
LE: loop exit
PB: predicated region body
PF: predicated region fallthrough
CT: control target
= control target key end

     0   :  { %v296_v0 = vmov 0.0|0.0   ;;  %vm52_vm0 = vcmask 130048   ;;  %vm149_vm1 = vcmask 261120   ;;  %s430_s2 = inlined_call_operand.vmem [shape: f32[144,32], index: 2, kind: input, shape index: {}]   ;;  %s431_s1 = inlined_call_operand.vmem [shape: f32[16,144], index: 1, kind: input, shape index: {}]   ;;  %s432_s4 = inlined_call_operand.vmem [shape: f32[32,128], index: 4, kind: input, shape index: {}]   ;;  %s433_s3 = inlined_call_operand.vmem [shape: f32[1,32], index: 3, kind: input, shape index: {}]   ;;  %s434_s0 = inlined_call_operand.vmem [shape: f32[16,32], index: 0, kind: input, shape index: {}]   ;;  %s435_s5 = inlined_call_operand.vmem [shape: f32[1,128], index: 5, kind: input, shape index: {}]   ;;  %s436_s6 = inlined_call_operand.vmem [shape: f32[16,128], index: 6, kind: output, shape index: {}]  }
   0x1   :  { %260 = vmatprep.subr.bf16.mxu0 %v296_v0  ;;  %v27_v1 = vld [vmem:[%s430_s2] sm:$0xff]  ;;  %v28_v2 = vld [vmem:[%s430_s2 + $0x8] sm:$0xff]  ;;  %v29_v3 = vld [vmem:[%s430_s2 + $0x10] sm:$0xff] }
   0x2   :  { %v261_v4 = vpack.c.bf16 %v28_v2, %v27_v1  ;;  %v30_v5 = vld [vmem:[%s430_s2 + $0x18] sm:$0xff]  ;;  %v31_v7 = vld [vmem:[%s430_s2 + $0x20] sm:$0xff]  ;;  %v32_v8 = vld [vmem:[%s430_s2 + $0x28] sm:$0xff] }
   0x3   :  { %v264_v6 = vpack.c.bf16 %v30_v5, %v29_v3  ;;  %v24_v9 = vld [vmem:[%s431_s1 + $0x8] sm:$0xff]  ;;  %v267_v10 = vpack.c.bf16 %v32_v8, %v31_v7  ;;  %v33_v11 = vld [vmem:[%s430_s2 + $0x30] sm:$0xff]  ;;  %v34_v12 = vld [vmem:[%s430_s2 + $0x38] sm:$0xff] }
   0x4   :  { %262 = vmatpush1.bf16.msra.mxu0 %v261_v4  ;;  %238 = vmatprep.mubr.msk.f32.mxu0 %vm52_vm0, %v24_v9  ;;  %v270_v13 = vpack.c.bf16 %v34_v12, %v33_v11  ;;  %v35_v14 = vld [vmem:[%s430_s2 + $0x40] sm:$0xff]  ;;  %v36_v15 = vld [vmem:[%s430_s2 + $0x48] sm:$0xff]  ;;  %v37_v17 = vld [vmem:[%s430_s2 + $0x50] sm:$0xff] }
   0x5   :  { %263 = vmatprep.subr.bf16.mxu0 %v296_v0  ;;  %v273_v16 = vpack.c.bf16 %v36_v15, %v35_v14  ;;  %v38_v18 = vld [vmem:[%s430_s2 + $0x58] sm:$0xff]  ;;  %v39_v20 = vld [vmem:[%s430_s2 + $0x60] sm:$0xff]  ;;  %v40_v21 = vld [vmem:[%s430_s2 + $0x68] sm:$0xff] }
   0x6   :  { %v276_v19 = vpack.c.bf16 %v38_v18, %v37_v17  ;;  %v279_v22 = vpack.c.bf16 %v40_v21, %v39_v20  ;;  %v41_v23 = vld [vmem:[%s430_s2 + $0x70] sm:$0xff]  ;;  %v42_v24 = vld [vmem:[%s430_s2 + $0x78] sm:$0xff]  ;;  %v43_v26 = vld [vmem:[%s430_s2 + $0x80] sm:$0xff] }
   0x7   :  { %v282_v25 = vpack.c.bf16 %v42_v24, %v41_v23  ;;  %v44_v27 = vld [vmem:[%s430_s2 + $0x88] sm:$0xff]  ;;  %v23_v29 = vld [vmem:[%s431_s1] sm:$0xff]  ;;  %v26_v30 = vld [vmem:[%s431_s1 + $0x18] sm:$0xff] }
   0x8   :  { %265 = vmatpush1.bf16.msra.mxu0 %v264_v6  ;;  %v285_v28 = vpack.c.bf16 %v44_v27, %v43_v26  ;;  %v25_v31 = vld [vmem:[%s431_s1 + $0x10] sm:$0xff]  ;;  %v138_v32 = vld [vmem:[%s432_s4] sm:$0xff]  ;;  %v139_v33 = vld [vmem:[%s432_s4 + $0x8] sm:$0xff] }
   0x9   :  { %266 = vmatprep.subr.bf16.mxu0 %v296_v0  ;;  %v287_v34 = vpack.c.bf16 %v139_v33, %v138_v32  ;;  %v140_v35 = vld [vmem:[%s432_s4 + $0x10] sm:$0xff]  ;;  %v141_v36 = vld [vmem:[%s432_s4 + $0x18] sm:$0xff]  ;;  %v237_v38 = vld [vmem:[%s433_s3] ss:$0 sm:$0xff] }
   0xa   :  { %v291_v37 = vpack.c.bf16 %v141_v36, %v140_v35  ;;  %v134_v40 = vld [vmem:[%s434_s0] sm:$0xff]  ;;  %v135_v45 = vld [vmem:[%s434_s0 + $0x8] sm:$0xff] }
   0xb   :  { %288 = vmatprep.subr.bf16.mxu1 %v287_v34  ;;  %v240_v49 = vld [vmem:[%s435_s5] ss:$0 sm:$0xff] }
   0xc   :  { %268 = vmatpush1.bf16.msra.mxu0 %v267_v10  ;;  %290 = vmatpush3.bf16.msra.mxu1 %v287_v34 }
   0xd   :  { %269 = vmatprep.subr.bf16.mxu0 %v296_v0  ;;  %292 = vmatprep.subr.bf16.mxu1 %v291_v37 }
  0x10   :  { %271 = vmatpush1.bf16.msra.mxu0 %v270_v13  ;;  %294 = vmatpush3.bf16.msra.mxu1 %v291_v37 }
  0x11   :  { %272 = vmatprep.subr.bf16.mxu0 %v296_v0 }
  0x14   :  { %274 = vmatpush1.bf16.msra.mxu0 %v273_v16 }
  0x15   :  { %275 = vmatprep.subr.bf16.mxu0 %v296_v0 }
  0x18   :  { %277 = vmatpush1.bf16.msra.mxu0 %v276_v19 }
  0x19   :  { %278 = vmatprep.subr.bf16.mxu0 %v296_v0 }
  0x1c   :  { %280 = vmatpush1.bf16.msra.mxu0 %v279_v22 }
  0x1d   :  { %281 = vmatprep.subr.bf16.mxu0 %v296_v0 }
  0x20   :  { %283 = vmatpush1.bf16.msra.mxu0 %v282_v25 }
  0x21   :  { %284 = vmatprep.subr.bf16.mxu0 %v296_v0 }
  0x24   :  { %286 = vmatpush1.bf16.msra.mxu0 %v285_v28 }
  0x27   :  { %124 = vmatmul.mubr.f32.vlgmr.msra.gmra.mrb[0].mxu0 %v23_v29 }
  0x28   :  { %239 = vmatprep.mubr.msk.f32.mxu0 %vm52_vm0, %v26_v30 }
  0x2b   :  { %129 = vmatmul.mubr.f32.gmra.mrb[2].mxu0 %v25_v31 }
  0xfa   :  { %v125_v39 = vpop.f32.mrb[0].mxu0 }
  0xfb   :  { %v126_v41 = vadd.f32 %v237_v38, %v125_v39  ;;  %v127_v42 = vpop.f32.mrb[1].mxu0 }
  0xfd   :  { %v136_v43 = vadd.f32 %v134_v40, %v126_v41 }
  0xfe   :  { %v130_v44 = vpop.f32.mrb[2].mxu0 }
  0xff   :  { %v131_v46 = vadd.f32 %v237_v38, %v130_v44  ;;  %v132_v47 = vpop.f32.mrb[3].mxu0  ;;  %257 = vmatprep.mubr.msk.f32.mxu1 %vm149_vm1, %v136_v43 }
 0x101   :  { %v137_v48 = vadd.f32 %v135_v45, %v131_v46 }
 0x103   :  { %258 = vmatmul.mubr.msk.f32.vlgmr.msra.gmra.mrb[0].mxu1 %vm149_vm1, %v137_v48 }
 0x1d6   :  { %v259_v50 = vpop.f32.mrb[0].mxu1 }
 0x1d7   :  { %v228_v51 = vadd.f32 %v259_v50, %v240_v49  ;;  %v222_v52 = vpop.f32.mrb[1].mxu1 }
 0x1d8   :  { %v223_v53 = vadd.f32 %v240_v49, %v222_v52 }
 0x1d9   :  { %232 = vst [vmem:[%s436_s6 + $0x8] sm:$0xff] %v228_v51 }
 0x1da   :  { %231 = vst [vmem:[%s436_s6] sm:$0xff] %v223_v53 }

// kernel: forward.4
= control target key start
LH: loop header
LB: loop body
LE: loop exit
PB: predicated region body
PF: predicated region fallthrough
CT: control target
= control target key end

     0   :  { %s2426_s21 = smov 0   ;;  %s2676_s0 = inlined_call_operand.vmem [shape: f32[16,32], index: 0, kind: input, shape index: {}]   ;;  %s2677_s1 = inlined_call_operand.vmem [shape: f32[2,8], index: 1, kind: input, shape index: {}]   ;;  %s2678_s2 = inlined_call_operand.vmem [shape: f32[1,32], index: 2, kind: input, shape index: {}]   ;;  %s2679_s3 = inlined_call_operand.vmem [shape: f32[1,32], index: 3, kind: input, shape index: {}]   ;;  %s2680_s4 = inlined_call_operand.vmem [shape: f32[2,32,96], index: 4, kind: input, shape index: {}]   ;;  %s2681_s5 = inlined_call_operand.vmem [shape: f32[2,1,96], index: 5, kind: input, shape index: {}]   ;;  %s2682_s6 = inlined_call_operand.vmem [shape: f32[2,32,32], index: 6, kind: input, shape index: {}]   ;;  %s2683_s7 = inlined_call_operand.vmem [shape: f32[2,1,32], index: 7, kind: input, shape index: {}]   ;;  %s2684_s8 = inlined_call_operand.vmem [shape: f32[2,1,32], index: 8, kind: input, shape index: {}]   ;;  %s2685_s9 = inlined_call_operand.vmem [shape: f32[2,1,32], index: 9, kind: input, shape index: {}]   ;;  %s2686_s10 = inlined_call_operand.vmem [shape: f32[2,32,64], index: 10, kind: input, shape index: {}]   ;;  %s2687_s11 = inlined_call_operand.vmem [shape: f32[2,1,64], index: 11, kind: input, shape index: {}]   ;;  %s2688_s12 = inlined_call_operand.vmem [shape: f32[2,64,32], index: 12, kind: input, shape index: {}]   ;;  %s2689_s13 = inlined_call_operand.vmem [shape: f32[2,1,32], index: 13, kind: input, shape index: {}]   ;;  %s2690_s14 = inlined_call_operand.vmem [shape: f32[2,1,32], index: 14, kind: input, shape index: {}]   ;;  %s2691_s15 = inlined_call_operand.vmem [shape: f32[2,1,32], index: 15, kind: input, shape index: {}]   ;;  %s2692_s16 = inlined_call_operand.vmem [shape: f32[16,32], index: 16, kind: output, shape index: {}]  }
   0x1   :  { %2697 = sst [smem:[#allocation5_spill]] %s2676_s0 }
   0x2   :  { %2698 = sst [smem:[#allocation6_spill]] %s2677_s1 }
   0x3   :  { %2699 = sst [smem:[#allocation7_spill]] %s2679_s3 }
   0x4   :  { %2700 = sst [smem:[#allocation8_spill]] %s2680_s4 }
   0x5   :  { %2701 = sst [smem:[#allocation9_spill]] %s2682_s6 }
   0x6   :  { %2702 = sst [smem:[#allocation10_spill]] %s2692_s16 }
   0x7 LB: > { %2703 = sst [smem:[#allocation3_spill]] %s2331_s21  ;;  %s2432_s22 = sadd.s32 4294967295, %s2331_s21   ;;  %s2331_s21 = sphi %s2426_s21, %s26_s21  }
   0x8   : > { %p2054_p0 = scmp.ge.s32.totalorder %s2331_s21, 1  ;;  %p551_p1 = scmp.lt.s32.totalorder %s2331_s21, 3 }
   0xa   : > { %p552_p2 = pnand %p2054_p0, %p551_p1 }
   0xc   : > { %555 = sbr.rel (%p552_p2) target bundleno = 2869 (0xb35), region = 84 }
  0x13   : > { %p635_p3 = scmp.lt.s32.totalorder %s2432_s22, 1  ;;  %s2704_s4 = sld [smem:[#allocation8_spill]] }
  0x14   : > { %s2705_s6 = sld [smem:[#allocation9_spill]]  ;;  %p2063_p4 = scmp.ne.s32.totalorder %s2432_s22, 0 }
  0x15   : > { %s2438_s23 = scalar_select %p635_p3, %s2432_s22, 1 }
  0x16   : > { %682 = sbr.rel (%p2063_p4) target bundleno = 347 (0x15b), region = 88  ;;  %s2707_s19 = sld [smem:[#allocation5_spill]] (!%p2063_p4)  ;;  %vm687_vm0 = vcmask (!%p2063_p4), 261120   ;;  %v2064_v21 = vld [vmem:[%s2678_s2] ss:$0 sm:$0xff] (!%p2063_p4) }
  0x17   : > { %s2097_s24 = sshll.u32 %s2438_s23, 5  ;;  %s672_s25 = scalar_lea.vmem %s2689_s13, %s2438_s23 }
  0x18   : > { %s675_s28 = scalar_lea.vmem %s2690_s14, %s2438_s23  ;;  %s678_s3 = scalar_lea.vmem %s2691_s15, %s2438_s23 }
  0x19   : > { %s2448_s30 = scalar_lea.vmem %s2704_s4, %s2097_s24  ;;  %s2470_s4 = scalar_lea.vmem %s2686_s10, %s2097_s24 }
  0x1a   : > { %s2453_s18 = scalar_lea.vmem %s2705_s6, %s2097_s24  ;;  %s664_s6 = scalar_lea.vmem %s2687_s11, %s2438_s23 }
  0x1b   : > { %2706 = sst [smem:[#allocation4_spill]] %s2453_s18  ;;  %s2100_s18 = sshll.u32 %s2438_s23, 6 }
  0x1c   : > { %s2480_s21 = scalar_lea.vmem %s2688_s12, %s2100_s18  ;;  %v683_v0 = vld [vmem:[%s2707_s19] sm:$0xff] (!%p2063_p4)  ;;  %v684_v1 = vld [vmem:[%s2707_s19 + $0x8] sm:$0xff] (!%p2063_p4)  ;;  %s2708_s24 = sld [smem:[#allocation7_spill]] (!%p2063_p4) }
  0x1d   : > { %v688_v2 = vsel %vm687_vm0, %v683_v0, 0.0  ;;  %v691_v3 = vsel %vm687_vm0, %v684_v1, 0.0 }
  0x1e   : > { %689 = vadd.xlane.f32.xlu0 %v688_v2 }
  0x22   : > { %692 = vadd.xlane.f32.xlu0 %v691_v3  ;;  %v2065_v23 = vld [vmem:[%s2708_s24] ss:$0 sm:$0xff] }
  0xab   : > { %v690_v4 = vpop.xlane.xlu0 %689 }
  0xac   : > { %v695_v5 = vmul.f32 0.03125, %v690_v4 }
  0xae   : > { %v697_v6 = vsub.f32 %v683_v0, %v695_v5 }
  0xaf   : > { %v693_v7 = vpop.xlane.xlu0 %692 }
  0xb0   : > { %v696_v8 = vmul.f32 0.03125, %v693_v7  ;;  %v699_v9 = vmul.f32 %v697_v6, %v697_v6 }
  0xb2   : > { %v698_v10 = vsub.f32 %v684_v1, %v696_v8  ;;  %v701_v11 = vsel %vm687_vm0, %v699_v9, 0.0 }
  0xb3   : > { %702 = vadd.xlane.f32.xlu1 %v701_v11 }
  0xb4   : > { %v700_v12 = vmul.f32 %v698_v10, %v698_v10 }
  0xb6   : > { %v704_v13 = vsel %vm687_vm0, %v700_v12, 0.0 }
  0xb7   : > { %705 = vadd.xlane.f32.xlu1 %v704_v13 }
 0x140   : > { %v703_v14 = vpop.xlane.xlu1 %702 }
 0x141   : > { %v707_v15 = vmul.f32 0.03125, %v703_v14 }
 0x143   : > { %v709_v16 = vadd.f32 1e-12, %v707_v15 }
 0x144   : > { %v706_v17 = vpop.xlane.xlu1 %705 }
 0x145   : > { %2293 = vrsqrt.f32 %v709_v16  ;;  %v708_v18 = vmul.f32 0.03125, %v706_v17 }
 0x147   : > { %v710_v19 = vadd.f32 1e-12, %v708_v18 }
 0x149   : > { %2295 = vrsqrt.f32 %v710_v19 }
 0x14f   : > { %v2294_v20 = vpop.eup %2293 }
 0x150   : > { %v713_v22 = vmul.f32 %v2294_v20, %v697_v6 }
 0x152   : > { %v721_v24 = vmul.f32 %v2064_v21, %v713_v22 }
 0x153   : > { %v2296_v25 = vpop.eup %2295 }
 0x154   : > { %v729_v26 = vadd.f32 %v2065_v23, %v721_v24  ;;  %v714_v27 = vmul.f32 %v2296_v25, %v698_v10 }
 0x156   : > { %731 = vst.msk [vmem:[#allocation2] sm:$0xff] %vm687_vm0, %v729_v26  ;;  %v722_v28 = vmul.f32 %v2064_v21, %v714_v27 }
 0x158   : > { %v730_v29 = vadd.f32 %v2065_v23, %v722_v28 }
 0x15a   : > { %732 = vst.msk [vmem:[#allocation2 + $0x8] sm:$0xff] %vm687_vm0, %v730_v29 }
 0x15b PF: > { %v735_v30 = vld [vmem:[%s2448_s30] sm:$0xff]  ;;  %v736_v31 = vld [vmem:[%s2448_s30 + $0x8] sm:$0xff]  ;;  %v737_v32 = vld [vmem:[%s2448_s30 + $0x10] sm:$0xff]  ;;  %vm746_vm1 = vcmask 261120   ;;  %v2333_v38 = vmov 0.0   ;;  %vm2334_vm2 = vmmov 0   ;;  %s2709_s0 = scalar_lea.vmem %s2681_s5, %s2438_s23  ;;  %v908_v50 = vlaneseq  ;;  %s2713_s1 = scalar_lea.vmem %s2684_s8, %s2438_s23 }
 0x15c   : > { %v2237_v33 = vpack.c.bf16 %v736_v31, %v735_v30  ;;  %v738_v34 = vld [vmem:[%s2448_s30 + $0x18] sm:$0xff]  ;;  %2166 = vmatprep.subr.mxu0 %v2333_v38  ;;  %2168 = vmatprep.mubr.msk.f32.mxu0 %vm2334_vm2, %v2333_v38  ;;  %v2066_v39 = vld [vmem:[%s2709_s0] ss:$0 sm:$0xff]  ;;  %s2335_s17 = smov 112   ;;  %s2336_s18 = smov 96   ;;  %vm832_vm3 = vcmask 130048  }
 0x15d   : > { %v2517_v35 = vld [vmem:[#allocation2] sm:$0xff]  ;;  %v2241_v36 = vpack.c.bf16 %v738_v34, %v737_v32  ;;  %s2337_s20 = smov 80   ;;  %v909_v51 = vshrl.u32 %v908_v50, 7  ;;  %s2710_s16 = sld [smem:[#allocation6_spill]]  ;;  %vm913_vm4 = vcmask 64512   ;;  %vm1779_vm5 = vcmask 523264  }
 0x15e   : > { %2153 = vmatprep.mubr.msk.f32.mxu1 %vm746_vm1, %v2517_v35  ;;  %2238 = vmatprep.subr.bf16.mxu1 %v2237_v33  ;;  %s2338_s26 = smov 64   ;;  %s2339_s24 = smov 48  }
 0x15f   : > { %2240 = vmatpush3.bf16.msra.mxu1 %v2237_v33  ;;  %v910_v52 = vsub.s32 0, %v909_v51  ;;  %v1253_v59 = vsub.s32 1, %v909_v51  ;;  %s2711_s30 = sld [smem:[#allocation4_spill]]  ;;  %s2340_s29 = smov 16  }
 0x160   : > { %2242 = vmatprep.subr.bf16.mxu1 %v2241_v36  ;;  %p2094_p5 = scmp.ne.s32.totalorder %s2432_s22, 1 }
 0x161   : > { %v2521_v37 = vld [vmem:[#allocation2 + $0x8] sm:$0xff] }
 0x163   : > { %2244 = vmatpush3.bf16.msra.mxu1 %v2241_v36  ;;  %v828_v53 = vld [vmem:[%s2710_s16] sm:$0x3] }
 0x164   : > { %2156 = vmatprep.subr.mxu1 %v2333_v38  ;;  %v911_v54 = vrot.slane %v828_v53, %v910_v52  ;;  %v1254_v1 = vrot.slane %v828_v53, %v1253_v59 }
 0x165   : > { %v1515_v52 = vld [vmem:[%s2711_s30] sm:$0xff]  ;;  %v1516_v53 = vld [vmem:[%s2711_s30 + $0x8] sm:$0xff] }
 0x166   : > { %2154 = vmatmul.mubr.msk.f32.vlgmr.msra.gmra.mrb[0].mxu1 %vm746_vm1, %v2521_v37 }
 0x167   : > { %2158 = vmatprep.mubr.msk.f32.mxu1 %vm2334_vm2, %v2333_v38 }
 0x239   : > { %v2155_v40 = vpop.f32.mrb[0].mxu1 }
 0x23a   : > { %v819_v41 = vpop.f32.mrb[1].mxu1  ;;  %v2540_v43 = vadd.f32 %v2155_v40, %v2066_v39 }
 0x23b   : > { %v2536_v42 = vadd.f32 %v2066_v39, %v819_v41 }
 0x23d   : > { %1001 = vrot.lane.b32.xlu1 %v2536_v42, %s2335_s17  ;;  %830 = vrot.lane.b32.xlu0 %v2536_v42, %s2336_s18 }
 0x241   : > { %1174 = vrot.lane.b32.xlu1 %v2540_v43, %s2336_s18  ;;  %1003 = vrot.lane.b32.xlu0 %v2536_v42, %s2337_s20  ;;  %s2712_s18 = scalar_lea.vmem %s2683_s7, %s2438_s23 }
 0x245   : > { %1343 = vrot.lane.b32.xlu1 %v2540_v43, %s2335_s17  ;;  %1345 = vrot.lane.b32.xlu0 %v2540_v43, %s2337_s20  ;;  %s2715_s20 = sld [smem:[#allocation10_spill]] (!%p2094_p5) }
 0x2af   : > { %v831_v44 = vpop.permute.xlu0 %830  ;;  %v1002_v45 = vpop.permute.xlu1 %1001 }
 0x2b0   : > { %2157 = vmatpush3.xpose.msk.msra.mxu1 %vm832_vm3, %v831_v44 }
 0x2b1   : > { %2161 = vmatprep.subr.mxu1 %v2333_v38 }
 0x2b3   : > { %2159 = vmatmul.mubr.msk.f32.vlgmr.msra.gmra.mrb[2].mxu1 %vm832_vm3, %v2536_v42  ;;  %v1004_v46 = vpop.permute.xlu0 %1003  ;;  %v1175_v47 = vpop.permute.xlu1 %1174 }
 0x2b4   : > { %2167 = vmatpush3.xpose.msk.msra.mxu0 %vm832_vm3, %v1004_v46  ;;  %2163 = vmatprep.mubr.msk.f32.mxu1 %vm2334_vm2, %v2333_v38 }
 0x2b5   : > { %2176 = vmatprep.subr.mxu0 %v2333_v38 }
 0x2b7   : > { %2169 = vmatmul.mubr.msk.f32.vlgmr.msra.gmra.mrb[0].mxu0 %vm832_vm3, %v1002_v45  ;;  %v1346_v48 = vpop.permute.xlu0 %1345  ;;  %v1344_v49 = vpop.permute.xlu1 %1343 }
 0x2b8   : > { %2177 = vmatpush3.xpose.msk.msra.mxu0 %vm832_vm3, %v1175_v47  ;;  %2178 = vmatprep.mubr.msk.f32.mxu0 %vm2334_vm2, %v2333_v38 }
 0x2b9   : > { %2186 = vmatprep.subr.mxu0 %v2333_v38 }
 0x2bb   : > { %2179 = vmatmul.mubr.msk.f32.vlgmr.msra.gmra.mrb[2].mxu0 %vm832_vm3, %v2540_v43 }
 0x2bc   : > { %2187 = vmatpush3.xpose.msk.msra.mxu0 %vm832_vm3, %v1346_v48  ;;  %2188 = vmatprep.mubr.msk.f32.mxu0 %vm2334_vm2, %v2333_v38 }
 0x2bf   : > { %2189 = vmatmul.mubr.msk.f32.vlgmr.msra.gmra.mrb[4].mxu0 %vm832_vm3, %v1344_v49 }
 0x386   : > { %v903_v55 = vpop.f32.mrb[2].mxu1 }
 0x387   : > { %v907_v56 = vmul.f32 0.25, %v903_v55  ;;  %v2160_v57 = vpop.f32.mrb[3].mxu1  ;;  %v1517_v55 = vld [vmem:[%s2711_s30 + $0x10] sm:$0xff] }
 0x389   : > { %v912_v58 = vadd.f32 %v911_v54, %v907_v56  ;;  %v1518_v56 = vld [vmem:[%s2711_s30 + $0x18] sm:$0xff] }
 0x38a   : > { %v1075_v60 = vpop.f32.mrb[0].mxu0  ;;  %v2249_v57 = vpack.c.bf16 %v1518_v56, %v1517_v55  ;;  %v1770_v56 = vld [vmem:[%s2480_s21 + $0x30] sm:$0xff] }
 0x38b   : > { %v1079_v61 = vmul.f32 0.25, %v1075_v60  ;;  %v2170_v62 = vpop.f32.mrb[1].mxu0  ;;  %v914_v63 = vsel %vm913_vm4, %v912_v58, -inf }
 0x38c   : > { %915 = vmax.xlane.f32.xlu0 %v914_v63 }
 0x38d   : > { %v1080_v0 = vadd.f32 %v1079_v61, %v911_v54  ;;  %v2245_v54 = vpack.c.bf16 %v1516_v53, %v1515_v52  ;;  %v1768_v53 = vld [vmem:[%s2480_s21 + $0x20] sm:$0xff] }
 0x38e   : > { %v1246_v2 = vpop.f32.mrb[2].mxu0 }
 0x38f   : > { %v1250_v3 = vmul.f32 0.25, %v1246_v2  ;;  %v2180_v4 = vpop.f32.mrb[3].mxu0  ;;  %v1081_v5 = vsel %vm913_vm4, %v1080_v0, -inf  ;;  %2246 = vmatprep.subr.bf16.mxu0 %v2245_v54 }
 0x390   : > { %1082 = vmax.xlane.f32.xlu1 %v1081_v5  ;;  %2248 = vmatpush3.bf16.msra.mxu0 %v2245_v54  ;;  %v2081_v5 = vld [vmem:[%s2712_s18] ss:$0 sm:$0xff]  ;;  %v1769_v54 = vld [vmem:[%s2480_s21 + $0x28] sm:$0xff] }
 0x391   : > { %v1255_v6 = vadd.f32 %v1254_v1, %v1250_v3  ;;  %2250 = vmatprep.subr.bf16.mxu0 %v2249_v57  ;;  %v2269_v55 = vpack.c.bf16 %v1769_v54, %v1768_v53 }
 0x392   : > { %v1417_v7 = vpop.f32.mrb[4].mxu0 }
 0x393   : > { %v1421_v8 = vmul.f32 0.25, %v1417_v7  ;;  %v2190_v9 = vpop.f32.mrb[5].mxu0  ;;  %v1256_v10 = vsel %vm913_vm4, %v1255_v6, -inf }
 0x394   : > { %1257 = vmax.xlane.f32.xlu0 %v1256_v10  ;;  %2252 = vmatpush3.bf16.msra.mxu0 %v2249_v57  ;;  %v1771_v57 = vld [vmem:[%s2480_s21 + $0x38] sm:$0xff] }
 0x395   : > { %v1422_v11 = vadd.f32 %v1421_v8, %v1254_v1 }
 0x397   : > { %v1423_v12 = vsel %vm913_vm4, %v1422_v11, -inf }
 0x398   : > { %1424 = vmax.xlane.f32.xlu0 %v1423_v12 }
 0x3a1   : > { %925 = vrot.lane.b32.xlu1 %v2536_v42, %s2338_s26 }
 0x419   : > { %v916_v13 = vpop.xlane.xlu0 %915 }
 0x41a   : > { %v917_v14 = vsub.f32 %v912_v58, %v916_v13 }
 0x41c   : > { %v918_v15 = vmul.f32 1.442695, %v917_v14 }
 0x41d   : > { %v1083_v16 = vpop.xlane.xlu1 %1082 }
 0x41e   : > { %2297 = vpow2.f32 %v918_v15  ;;  %v1084_v17 = vsub.f32 %v1080_v0, %v1083_v16 }
 0x420   : > { %v1085_v18 = vmul.f32 1.442695, %v1084_v17 }
 0x421   : > { %v926_v19 = vpop.permute.xlu1 %925  ;;  %v1258_v20 = vpop.xlane.xlu0 %1257 }
 0x422   : > { %2299 = vpow2.f32 %v1085_v18  ;;  %v1259_v21 = vsub.f32 %v1255_v6, %v1258_v20  ;;  %2162 = vmatpush3.msra.mxu1 %v926_v19 }
 0x423   : > { %2171 = vmatprep.subr.mxu1 %v2333_v38 }
 0x424   : > { %v1260_v22 = vmul.f32 1.442695, %v1259_v21 }
 0x425   : > { %v1425_v23 = vpop.xlane.xlu0 %1424 }
 0x426   : > { %2301 = vpow2.f32 %v1260_v22  ;;  %v1426_v24 = vsub.f32 %v1422_v11, %v1425_v23  ;;  %v1654_v22 = vld [vmem:[%s2470_s4] sm:$0xff]  ;;  %v1655_v23 = vld [vmem:[%s2470_s4 + $0x8] sm:$0xff] }
 0x428   : > { %v2298_v25 = vpop.eup %2297  ;;  %v1427_v26 = vmul.f32 1.442695, %v1426_v24  ;;  %v2253_v24 = vpack.c.bf16 %v1655_v23, %v1654_v22 }
 0x429   : > { %v920_v27 = vsel %vm913_vm4, %v2298_v25, 0.0 }
 0x42a   : > { %2303 = vpow2.f32 %v1427_v26  ;;  %921 = vadd.xlane.f32.xlu1 %v920_v27  ;;  %v1657_v26 = vld [vmem:[%s2470_s4 + $0x18] sm:$0xff] }
 0x42c   : > { %v2300_v28 = vpop.eup %2299 }
 0x42d   : > { %v1087_v29 = vsel %vm913_vm4, %v2300_v28, 0.0 }
 0x42e   : > { %1088 = vadd.xlane.f32.xlu0 %v1087_v29 }
 0x430   : > { %v2302_v30 = vpop.eup %2301 }
 0x431   : > { %v1262_v31 = vsel %vm913_vm4, %v2302_v30, 0.0 }
 0x432   : > { %1263 = vadd.xlane.f32.xlu1 %v1262_v31 }
 0x434   : > { %v2304_v32 = vpop.eup %2303 }
 0x435   : > { %v1429_v33 = vsel %vm913_vm4, %v2304_v32, 0.0 }
 0x436   : > { %1430 = vadd.xlane.f32.xlu0 %v1429_v33 }
 0x443   : > { %1267 = vrot.lane.b32.xlu1 %v2540_v43, %s2338_s26  ;;  %s2714_s26 = scalar_lea.vmem %s2685_s9, %s2438_s23 }
 0x447   : > { %1434 = vrot.lane.b32.xlu1 %v2540_v43, %s2339_s24 }
 0x44c   : > { %1092 = vrot.lane.b32.xlu0 %v2536_v42, %s2339_s24 }
 0x4b7   : > { %v922_v34 = vpop.xlane.xlu1 %921 }
 0x4b8   : > { %2305 = vrcp.f32 %v922_v34 }
 0x4bb   : > { %v1089_v36 = vpop.xlane.xlu0 %1088 }
 0x4bc   : > { %2307 = vrcp.f32 %v1089_v36  ;;  %v2084_v36 = vld [vmem:[%s2713_s1] ss:$0 sm:$0xff] }
 0x4bf   : > { %v1264_v39 = vpop.xlane.xlu1 %1263 }
 0x4c0   : > { %2309 = vrcp.f32 %v1264_v39 }
 0x4c2   : > { %v2306_v40 = vpop.eup %2305 }
 0x4c3   : > { %v924_v41 = vmul.f32 %v2306_v40, %v2298_v25  ;;  %v1431_v44 = vpop.xlane.xlu0 %1430  ;;  %v1268_v43 = vpop.permute.xlu1 %1267  ;;  %v1656_v25 = vld [vmem:[%s2470_s4 + $0x10] sm:$0xff]  ;;  %v2085_v40 = vld [vmem:[%s2714_s26] ss:$0 sm:$0xff] }
 0x4c4   : > { %2311 = vrcp.f32 %v1431_v44  ;;  %v2257_v27 = vpack.c.bf16 %v1657_v26, %v1656_v25 }
 0x4c5   : > { %2164 = vmatmul.mubr.msk.f32.vlgmr.msra.gmra.mrb[4].mxu1 %vm913_vm4, %v924_v41 }
 0x4c6   : > { %v2308_v45 = vpop.eup %2307  ;;  %2173 = vmatprep.mubr.msk.f32.mxu1 %vm2334_vm2, %v2333_v38 }
 0x4c7   : > { %v1091_v46 = vmul.f32 %v2308_v45, %v2300_v28  ;;  %v1093_v47 = vpop.permute.xlu0 %1092  ;;  %v1435_v49 = vpop.permute.xlu1 %1434 }
 0x4c8   : > { %2172 = vmatpush3.msra.mxu1 %v1093_v47 }
 0x4c9   : > { %2174 = vmatmul.mubr.msk.f32.vlgmr.msra.gmra.mrb[6].mxu1 %vm913_vm4, %v1091_v46  ;;  %2181 = vmatprep.subr.mxu1 %v2333_v38 }
 0x4ca   : > { %v2310_v42 = vpop.eup %2309  ;;  %2182 = vmatpush3.msra.mxu1 %v1268_v43  ;;  %2183 = vmatprep.mubr.msk.f32.mxu1 %vm2334_vm2, %v2333_v38 }
 0x4cb   : > { %v1266_v48 = vmul.f32 %v2310_v42, %v2302_v30  ;;  %2191 = vmatprep.subr.mxu1 %v2333_v38  ;;  %v1764_v42 = vld [vmem:[%s2480_s21] sm:$0xff] }
 0x4cd   : > { %2184 = vmatmul.mubr.msk.f32.vlgmr.msra.gmra.mrb[8].mxu1 %vm913_vm4, %v1266_v48  ;;  %v1765_v48 = vld [vmem:[%s2480_s21 + $0x8] sm:$0xff] }
 0x4ce   : > { %v2312_v50 = vpop.eup %2311  ;;  %2192 = vmatpush3.msra.mxu1 %v1435_v49  ;;  %2193 = vmatprep.mubr.msk.f32.mxu1 %vm2334_vm2, %v2333_v38  ;;  %v2261_v49 = vpack.c.bf16 %v1765_v48, %v1764_v42  ;;  %v2093_v42 = vld [vmem:[%s678_s3] ss:$0 sm:$0xff] }
 0x4cf   : > { %v1433_v51 = vmul.f32 %v2312_v50, %v2304_v32  ;;  %2254 = vmatprep.subr.bf16.mxu1 %v2253_v24  ;;  %v1766_v50 = vld [vmem:[%s2480_s21 + $0x10] sm:$0xff] }
 0x4d0   : > { %2262 = vmatprep.subr.bf16.mxu0 %v2261_v49 }
 0x4d1   : > { %2194 = vmatmul.mubr.msk.f32.vlgmr.msra.gmra.mrb[10].mxu1 %vm913_vm4, %v1433_v51  ;;  %v1767_v51 = vld [vmem:[%s2480_s21 + $0x18] sm:$0xff] }
 0x4d2   : > { %2256 = vmatpush3.bf16.msra.mxu1 %v2253_v24  ;;  %v2265_v52 = vpack.c.bf16 %v1767_v51, %v1766_v50 }
 0x4d3   : > { %2258 = vmatprep.subr.bf16.mxu1 %v2257_v27 }
 0x4d6   : > { %2260 = vmatpush3.bf16.msra.mxu1 %v2257_v27 }
 0x598   : > { %v997_v58 = vpop.f32.mrb[4].mxu1 }
 0x599   : > { %v2165_v59 = vpop.f32.mrb[5].mxu1 }
 0x59a   : > { %v2086_v59 = vld [vmem:[%s664_s6] ss:$0 sm:$0xff] }
 0x59c   : > { %v1164_v60 = vpop.f32.mrb[6].mxu1 }
 0x59d   : > { %1169 = vrot.lane.b32.xlu0 %v1164_v60, %s2340_s29  ;;  %v2175_v38 = vpop.f32.mrb[7].mxu1 }
 0x5a0   : > { %v1339_v61 = vpop.f32.mrb[8].mxu1 }
 0x5a1   : > { %v2185_v62 = vpop.f32.mrb[9].mxu1 }
 0x5a4   : > { %v1506_v63 = vpop.f32.mrb[10].mxu1 }
 0x5a5   : > { %1511 = vrot.lane.b32.xlu1 %v1506_v63, %s2340_s29  ;;  %v2195_v0 = vpop.f32.mrb[11].mxu1 }
 0x60f   : > { %v1170_v1 = vpop.permute.xlu0 %1169 }
 0x610   : > { %v1172_v2 = vsel %vm832_vm3, %v997_v58, %v1170_v1  ;;  %v2273_v58 = vpack.c.bf16 %v1771_v57, %v1770_v56 }
 0x611   : > { %2204 = vmatprep.mubr.msk.f32.mxu0 %vm746_vm1, %v1172_v2 }
 0x617   : > { %v1512_v3 = vpop.permute.xlu1 %1511 }
 0x618   : > { %v1514_v4 = vsel %vm832_vm3, %v1339_v61, %v1512_v3 }
 0x619   : > { %2205 = vmatmul.mubr.msk.f32.vlgmr.msra.gmra.mrb[6].mxu0 %vm746_vm1, %v1514_v4 }
 0x61a   : > { %2264 = vmatpush3.bf16.msra.mxu0 %v2261_v49 }
 0x61b   : > { %2266 = vmatprep.subr.bf16.mxu0 %v2265_v52 }
 0x61e   : > { %2268 = vmatpush3.bf16.msra.mxu0 %v2265_v52 }
 0x61f   : > { %2270 = vmatprep.subr.bf16.mxu0 %v2269_v55 }
 0x622   : > { %2272 = vmatpush3.bf16.msra.mxu0 %v2269_v55 }
 0x623   : > { %2274 = vmatprep.subr.bf16.mxu0 %v2273_v58 }
 0x626   : > { %2276 = vmatpush3.bf16.msra.mxu0 %v2273_v58 }
 0x6ec   : > { %v2206_v6 = vpop.f32.mrb[6].mxu0 }
 0x6ed   : > { %v1604_v7 = vadd.f32 %v2206_v6, %v2081_v5  ;;  %v1598_v8 = vpop.f32.mrb[7].mxu0 }
 0x6ee   : > { %v1599_v9 = vadd.f32 %v2081_v5, %v1598_v8 }
 0x6ef   : > { %v1608_v10 = vadd.f32 %v1604_v7, %v2521_v37 }
 0x6f0   : > { %v1607_v11 = vadd.f32 %v1599_v9, %v2517_v35 }
 0x6f1   : > { %v1614_v12 = vsel %vm746_vm1, %v1608_v10, 0.0 }
 0x6f2   : > { %1615 = vadd.xlane.f32.xlu1 %v1614_v12  ;;  %v1611_v13 = vsel %vm746_vm1, %v1607_v11, 0.0 }
 0x6f3   : > { %1612 = vadd.xlane.f32.xlu0 %v1611_v13 }
 0x77f   : > { %v1616_v14 = vpop.xlane.xlu1 %1615 }
 0x780   : > { %v1619_v15 = vmul.f32 0.03125, %v1616_v14  ;;  %v1613_v16 = vpop.xlane.xlu0 %1612 }
 0x781   : > { %v1618_v17 = vmul.f32 0.03125, %v1613_v16 }
 0x782   : > { %v1621_v18 = vsub.f32 %v1608_v10, %v1619_v15 }
 0x783   : > { %v1620_v19 = vsub.f32 %v1607_v11, %v1618_v17  ;;  %v2089_v17 = vld [vmem:[%s672_s25] ss:$0 sm:$0xff] }
 0x784   : > { %v1623_v35 = vmul.f32 %v1621_v18, %v1621_v18 }
 0x785   : > { %v1622_v20 = vmul.f32 %v1620_v19, %v1620_v19 }
 0x786   : > { %v1627_v21 = vsel %vm746_vm1, %v1623_v35, 0.0 }
 0x787   : > { %v1624_v37 = vsel %vm746_vm1, %v1622_v20, 0.0 }
 0x788   : > { %1625 = vadd.xlane.f32.xlu0 %v1624_v37 }
 0x78c   : > { %1628 = vadd.xlane.f32.xlu0 %v1627_v21 }
 0x815   : > { %v1626_v28 = vpop.xlane.xlu0 %1625 }
 0x816   : > { %v1630_v29 = vmul.f32 0.03125, %v1626_v28 }
 0x818   : > { %v1632_v30 = vadd.f32 1e-12, %v1630_v29 }
 0x819   : > { %v1629_v31 = vpop.xlane.xlu0 %1628 }
 0x81a   : > { %2313 = vrsqrt.f32 %v1632_v30  ;;  %v1631_v32 = vmul.f32 0.03125, %v1629_v31 }
 0x81c   : > { %v1633_v33 = vadd.f32 1e-12, %v1631_v32 }
 0x81e   : > { %2315 = vrsqrt.f32 %v1633_v33 }
 0x824   : > { %v2314_v34 = vpop.eup %2313 }
 0x825   : > { %v1636_v39 = vmul.f32 %v2314_v34, %v1620_v19 }
 0x827   : > { %v1644_v41 = vmul.f32 %v2084_v36, %v1636_v39 }
 0x828   : > { %v2316_v44 = vpop.eup %2315 }
 0x829   : > { %v1637_v45 = vmul.f32 %v2316_v44, %v1621_v18  ;;  %v1652_v46 = vadd.f32 %v2085_v40, %v1644_v41 }
 0x82b   : > { %v1645_v43 = vmul.f32 %v2084_v36, %v1637_v45  ;;  %2215 = vmatprep.mubr.msk.f32.mxu1 %vm746_vm1, %v1652_v46 }
 0x82d   : > { %v1653_v47 = vadd.f32 %v2085_v40, %v1645_v43 }
 0x82f   : > { %2216 = vmatmul.mubr.msk.f32.vlgmr.msra.gmra.mrb[12].mxu1 %vm746_vm1, %v1653_v47 }
 0x902   : > { %v2217_v60 = vpop.f32.mrb[12].mxu1 }
 0x903   : > { %v1743_v38 = vadd.f32 %v2217_v60, %v2086_v59  ;;  %v1737_v61 = vpop.f32.mrb[13].mxu1 }
 0x904   : > { %v1738_v62 = vadd.f32 %v2086_v59, %v1737_v61 }
 0x905   : > { %v1747_v63 = vmul.f32 %v1743_v38, %v1743_v38 }
 0x906   : > { %v1746_v0 = vmul.f32 %v1738_v62, %v1738_v62 }
 0x907   : > { %v1749_v1 = vmul.f32 %v1747_v63, %v1743_v38 }
 0x908   : > { %v1748_v2 = vmul.f32 %v1746_v0, %v1738_v62 }
 0x909   : > { %v1751_v3 = vmul.f32 0.044715, %v1749_v1 }
 0x90a   : > { %v1750_v4 = vmul.f32 0.044715, %v1748_v2 }
 0x90b   : > { %v1753_v5 = vadd.f32 %v1751_v3, %v1743_v38 }
 0x90c   : > { %v1752_v6 = vadd.f32 %v1750_v4, %v1738_v62 }
 0x90d   : > { %v1755_v7 = vmul.f32 0.7978846, %v1753_v5 }
 0x90e   : > { %v1754_v8 = vmul.f32 0.7978846, %v1752_v6 }
 0x90f   : > { %2317 = vtanh.f32 %v1755_v7 }
 0x910   : > { %2319 = vtanh.f32 %v1754_v8 }
 0x919   : > { %v2318_v9 = vpop.eup %2317 }
 0x91a   : > { %v2320_v10 = vpop.eup %2319  ;;  %v1759_v11 = vadd.f32 1.0, %v2318_v9 }
 0x91b   : > { %v1758_v12 = vadd.f32 1.0, %v2320_v10 }
 0x91c   : > { %v1761_v13 = vmul.f32 0.5, %v1759_v11 }
 0x91d   : > { %v1760_v14 = vmul.f32 0.5, %v1758_v12 }
 0x91e   : > { %v1763_v16 = vmul.f32 %v1761_v13, %v1743_v38 }
 0x91f   : > { %v1762_v15 = vmul.f32 %v1760_v14, %v1738_v62 }
 0x921   : > { %2234 = vmatprep.mubr.msk.f32.mxu0 %vm1779_vm5, %v1762_v15 }
 0x922   : > { %2235 = vmatmul.mubr.msk.f32.vlgmr.msra.gmra.mrb[8].mxu0 %vm1779_vm5, %v1763_v16 }
 0x9f5   : > { %v2236_v18 = vpop.f32.mrb[8].mxu0 }
 0x9f6   : > { %v1858_v19 = vadd.f32 %v2236_v18, %v2089_v17  ;;  %v1852_v20 = vpop.f32.mrb[9].mxu0 }
 0x9f7   : > { %v1853_v37 = vadd.f32 %v2089_v17, %v1852_v20 }
 0x9f8   : > { %v1862_v35 = vadd.f32 %v1858_v19, %v1653_v47 }
 0x9f9   : > { %v1861_v21 = vadd.f32 %v1853_v37, %v1652_v46  ;;  %v2092_v46 = vld [vmem:[%s675_s28] ss:$0 sm:$0xff] }
 0x9fa   : > { %v1868_v22 = vsel %vm746_vm1, %v1862_v35, 0.0 }
 0x9fb   : > { %1869 = vadd.xlane.f32.xlu0 %v1868_v22  ;;  %v1865_v23 = vsel %vm746_vm1, %v1861_v21, 0.0 }
 0x9fc   : > { %1866 = vadd.xlane.f32.xlu1 %v1865_v23 }
 0xa88   : > { %v1870_v24 = vpop.xlane.xlu0 %1869 }
 0xa89   : > { %v1872_v25 = vmul.f32 0.03125, %v1870_v24  ;;  %v1867_v26 = vpop.xlane.xlu1 %1866 }
 0xa8a   : > { %v1871_v27 = vmul.f32 0.03125, %v1867_v26 }
 0xa8b   : > { %v1874_v28 = vsub.f32 %v1862_v35, %v1872_v25 }
 0xa8c   : > { %v1873_v29 = vsub.f32 %v1861_v21, %v1871_v27 }
 0xa8d   : > { %v1876_v30 = vmul.f32 %v1874_v28, %v1874_v28 }
 0xa8e   : > { %v1875_v31 = vmul.f32 %v1873_v29, %v1873_v29 }
 0xa8f   : > { %v1880_v32 = vsel %vm746_vm1, %v1876_v30, 0.0 }
 0xa90   : > { %1881 = vadd.xlane.f32.xlu0 %v1880_v32  ;;  %v1877_v33 = vsel %vm746_vm1, %v1875_v31, 0.0 }
 0xa91   : > { %1878 = vadd.xlane.f32.xlu1 %v1877_v33 }
 0xb1d   : > { %v1882_v34 = vpop.xlane.xlu0 %1881 }
 0xb1e   : > { %v1884_v36 = vmul.f32 0.03125, %v1882_v34  ;;  %v1879_v39 = vpop.xlane.xlu1 %1878 }
 0xb1f   : > { %v1883_v40 = vmul.f32 0.03125, %v1879_v39 }
 0xb20   : > { %v1886_v41 = vadd.f32 1e-12, %v1884_v36 }
 0xb21   : > { %v1885_v44 = vadd.f32 1e-12, %v1883_v40 }
 0xb22   : > { %2321 = vrsqrt.f32 %v1886_v41 }
 0xb23   : > { %2323 = vrsqrt.f32 %v1885_v44 }
 0xb2c   : > { %v2322_v45 = vpop.eup %2321 }
 0xb2d   : > { %v2324_v43 = vpop.eup %2323  ;;  %v1890_v47 = vmul.f32 %v2322_v45, %v1874_v28 }
 0xb2e   : > { %v1889_v48 = vmul.f32 %v2324_v43, %v1873_v29  ;;  %1912 = sbr.rel (%p2094_p5) target bundleno = 2869 (0xb35), region = 92 }
 0xb2f   : > { %v1898_v49 = vmul.f32 %v2092_v46, %v1890_v47 }
 0xb30   : > { %v1897_v50 = vmul.f32 %v2092_v46, %v1889_v48 }
 0xb31   : > { %v1906_v51 = vadd.f32 %v2093_v42, %v1898_v49 }
 0xb32   : > { %v1905_v52 = vadd.f32 %v2093_v42, %v1897_v50 }
 0xb33   : > { %1908 = vst.msk [vmem:[#allocation2 + $0x8] sm:$0xff] %vm746_vm1, %v1906_v51  ;;  %1914 = vst.msk [vmem:[%s2715_s20 + $0x8] sm:$0xff] (!%p2094_p5), %vm746_vm1, %v1906_v51 }
 0xb34   : > { %1907 = vst.msk [vmem:[#allocation2] sm:$0xff] %vm746_vm1, %v1905_v52  ;;  %1913 = vst.msk [vmem:[%s2715_s20] sm:$0xff] (!%p2094_p5), %vm746_vm1, %v1905_v52 }
 0xb35 PF: > { %s2716_s27 = sld [smem:[#allocation3_spill]] }
 0xb3b   : > { %s26_s21 = sadd.s32 1, %s2716_s27  }
 0xb3c   : > { %p23_p6 = scmp.ge.s32.totalorder %s26_s21, 4  }
 0xb3e   :  { %25 = sbr.rel (!%p23_p6) target bundleno = 7 (0x7), region = 151 }

</bundles_post_ra>
